<compile_context>
chip_gen: v7x
topology: tpu7x:2x2x1
jax: 0.10.0
libtpu: 0.0.40
codegen_flags: <defaults>
</compile_context>

<pallas_src>
import functools
import math

import jax
import jax.numpy as jnp
from jax.experimental import pallas as pl
from jax.experimental.pallas import tpu as pltpu

EPS = 1e-5


def _ln(t, w, b=None):
    """LayerNorm over last axis (biased var). b=None == imagen's LayerNorm (scale only)."""
    mu = jnp.mean(t, axis=-1, keepdims=True)
    c = t - mu
    var = jnp.mean(c * c, axis=-1, keepdims=True)
    y = c * jax.lax.rsqrt(var + EPS) * w
    if b is not None:
        y = y + b
    return y


def _gelu(x):
    # TODO(synk): PyTorch nn.GELU() defaults to the exact erf form; the tanh
    # approximation is used here (erf is not reliably lowerable in Mosaic).
    c = math.sqrt(2.0 / math.pi)
    return 0.5 * x * (1.0 + jnp.tanh(c * (x + 0.044715 * x * x * x)))


def _resampler_kernel(bc, N, D, Lt, Lt_pad, heads, dh,
                      x_hat_ref, lat0_ref,
                      nxw_ref, nxb_ref, nlw_ref, nlb_ref,
                      wq_ref, wk_ref, wv_ref, wo_ref, olw_ref, olb_ref,
                      ffg1_ref, ffw1_ref, ffg2_ref, ffw2_ref,
                      out_ref, lat_ref):
    inner = heads * dh
    M = N + Lt_pad
    scale = dh ** -0.5
    d = pl.program_id(1)

    # ---- seed the f32 latent carry once per batch chunk ----
    @pl.when(d == 0)
    def _seed():
        lat_ref[...] = lat0_ref[...]

    lat = lat_ref[...]                                        # (bc, Lt_pad, D) f32 carry

    # ---- PerceiverAttention ----
    # x-branch LN statistics were hoisted to the wrapper; only the per-layer affine here.
    xn = x_hat_ref[...] * nxw_ref[0] + nxb_ref[0]             # (bc, N, D) f32
    latn = _ln(lat, nlw_ref[0], nlb_ref[0])                   # (bc, Lt_pad, D) f32
    kv_in = jnp.concatenate([xn, latn], axis=1)               # (bc, M, D) f32, one concat/layer

    latn2 = latn.reshape(bc * Lt_pad, D).astype(jnp.bfloat16)
    kvin2 = kv_in.reshape(bc * M, D).astype(jnp.bfloat16)

    q = (jnp.dot(latn2, wq_ref[0], preferred_element_type=jnp.float32) * scale
         ).reshape(bc, Lt_pad, inner).astype(jnp.bfloat16)
    k = jnp.dot(kvin2, wk_ref[0], preferred_element_type=jnp.float32
                ).reshape(bc, M, inner).astype(jnp.bfloat16)
    v = jnp.dot(kvin2, wv_ref[0], preferred_element_type=jnp.float32
                ).reshape(bc, M, inner).astype(jnp.bfloat16)

    # TODO(synk): optional attention-mask path of PerceiverAttention is not
    # implemented (PerceiverResampler.forward is exercised with mask=None).
    head_outs = []
    for h in range(heads):
        c0 = h * dh
        qh = q[:, :, c0:c0 + dh]                              # (bc, Lt_pad, dh)
        kh = k[:, :, c0:c0 + dh]                              # (bc, M, dh)
        vh = v[:, :, c0:c0 + dh]                              # (bc, M, dh)
        sim = jnp.einsum('bqd,bkd->bqk', qh, kh,
                         preferred_element_type=jnp.float32)  # (bc, Lt_pad, M) f32
        if Lt_pad > Lt:                                       # mask padded latent key columns
            col = jax.lax.broadcasted_iota(jnp.int32, (Lt_pad, M), 1)
            sim = jnp.where((col < N + Lt)[None], sim, -1e30)
        sim = sim - jnp.max(sim, axis=-1, keepdims=True)
        e = jnp.exp(sim)
        p = e * pl.reciprocal(jnp.sum(e, axis=-1, keepdims=True), approx=True)
        head_outs.append(jnp.einsum('bqk,bkd->bqd', p.astype(jnp.bfloat16), vh,
                                    preferred_element_type=jnp.float32))
    ao = jnp.concatenate(head_outs, axis=-1)                  # (bc, Lt_pad, inner) f32

    o = jnp.dot(ao.reshape(bc * Lt_pad, inner).astype(jnp.bfloat16), wo_ref[0],
                preferred_element_type=jnp.float32).reshape(bc, Lt_pad, D)
    o = _ln(o, olw_ref[0], olb_ref[0])                        # to_out LayerNorm
    lat = lat + o                                             # residual

    # ---- FeedForward ----
    h0 = _ln(lat, ffg1_ref[0]).reshape(bc * Lt_pad, D).astype(jnp.bfloat16)
    h1 = jnp.dot(h0, ffw1_ref[0], preferred_element_type=jnp.float32)
    h1 = _gelu(h1)
    h1 = _ln(h1, ffg2_ref[0]).astype(jnp.bfloat16)
    lat = lat + jnp.dot(h1, ffw2_ref[0],
                        preferred_element_type=jnp.float32).reshape(bc, Lt_pad, D)

    lat_ref[...] = lat                                        # keep carry in f32

    @pl.when(d == pl.num_programs(1) - 1)
    def _store():
        out_ref[...] = lat.astype(out_ref.dtype)


def perceiver_resampler_forward(params, x, *, num_batch_chunks=1):
    """Matches PerceiverResampler.forward (mask=None). x: (B, N, dim) -> (B, n_mp+L, dim).

    num_batch_chunks > 1 adds a leading "parallel" grid axis (independent latent
    streams per batch) so v7x's two TensorCores can each take half the batch.
    """
    B, N, D = x.shape
    heads = int(params["heads"])
    dh = int(params["dim_head"])
    inner = heads * dh
    depth = params["wq"].shape[0]
    hidden = params["ffw1"].shape[-1]
    L = params["latents"].shape[0]
    n_mp = int(params["n_mp"])
    Lt = n_mp + L
    Lt_pad = -(-Lt // 8) * 8                                  # pad latent rows to sublane multiple
    assert B % num_batch_chunks == 0
    bc = B // num_batch_chunks

    # ---- one-time work hoisted out of the depth loop (runs once, in XLA) ----
    xf = x.astype(jnp.float32)
    pos = params["pos_emb"][:N].astype(jnp.float32)
    xp = xf + pos[None]

    mu = jnp.mean(xp, axis=-1, keepdims=True)                 # x-branch LN stats, computed once
    var = jnp.mean(jnp.square(xp - mu), axis=-1, keepdims=True)
    x_hat = (xp - mu) * jax.lax.rsqrt(var + EPS)              # (B, N, D) f32

    mp = jnp.mean(xf, axis=1)                                 # masked_mean with all-ones mask
    mpn = _ln(mp, params["mp_g"])
    mp_lat = (mpn @ params["mp_w"] + params["mp_b"]).reshape(B, n_mp, D)
    lat0 = jnp.concatenate(
        [mp_lat, jnp.broadcast_to(params["latents"][None], (B, L, D))], axis=1)
    if Lt_pad > Lt:
        lat0 = jnp.pad(lat0, ((0, 0), (0, Lt_pad - Lt), (0, 0)))
    lat0 = lat0.astype(jnp.float32)

    # Streamed weights go to the MXU in bf16 (f32 accumulation in-kernel).
    bf = lambda a: a.astype(jnp.bfloat16)
    wq = bf(params["wq"])
    wk = bf(params["wkv"][:, :, :inner])
    wv = bf(params["wkv"][:, :, inner:])
    wo = bf(params["wo"])
    ffw1 = bf(params["ffw1"])
    ffw2 = bf(params["ffw2"])

    kernel = functools.partial(_resampler_kernel, bc, N, D, Lt, Lt_pad, heads, dh)

    chunk3 = lambda c, d: (c, 0, 0)   # resident per batch chunk
    layer3 = lambda c, d: (d, 0, 0)   # streamed per depth step

    # ---- scoped-VMEM budget sized to the real working set ----
    M = N + Lt_pad
    w_layer = 2 * (4 * D * inner + 2 * D * hidden)            # bf16 per-layer weights
    ln_layer = 4 * (7 * D + hidden)
    resident = 4 * (bc * N * D + 2 * bc * Lt_pad * D) + x.dtype.itemsize * bc * Lt_pad * D
    temps = 4 * bc * (M * (2 * inner + 2 * D)
                      + Lt_pad * (3 * inner + hidden + 2 * D + heads * M))
    vmem_limit = int(min(96 << 20,
                         max(32 << 20,
                             2 * (w_layer + ln_layer) + resident + 2 * temps + (8 << 20))))

    grid_spec = pltpu.PrefetchScalarGridSpec(
        num_scalar_prefetch=0,
        grid=(num_batch_chunks, depth),
        in_specs=[
            pl.BlockSpec((bc, N, D), chunk3),            # x_hat (pre-normalized x+pos)
            pl.BlockSpec((bc, Lt_pad, D), chunk3),       # initial latents (mean-pooled ++ learned)
            pl.BlockSpec((1, 1, D), layer3),             # attn norm(x) weight
            pl.BlockSpec((1, 1, D), layer3),             # attn norm(x) bias
            pl.BlockSpec((1, 1, D), layer3),             # attn norm(latents) weight
            pl.BlockSpec((1, 1, D), layer3),             # attn norm(latents) bias
            pl.BlockSpec((1, D, inner), layer3),         # W_q (bf16)
            pl.BlockSpec((1, D, inner), layer3),         # W_k (bf16)
            pl.BlockSpec((1, D, inner), layer3),         # W_v (bf16)
            pl.BlockSpec((1, inner, D), layer3),         # W_out (bf16)
            pl.BlockSpec((1, 1, D), layer3),             # to_out LayerNorm weight
            pl.BlockSpec((1, 1, D), layer3),             # to_out LayerNorm bias
            pl.BlockSpec((1, 1, D), layer3),             # ff LayerNorm1 g
            pl.BlockSpec((1, D, hidden), layer3),        # ff W1 (bf16)
            pl.BlockSpec((1, 1, hidden), layer3),        # ff LayerNorm2 g
            pl.BlockSpec((1, hidden, D), layer3),        # ff W2 (bf16)
        ],
        out_specs=pl.BlockSpec((bc, Lt_pad, D), chunk3), # written once, on the last depth step
        scratch_shapes=[pltpu.VMEM((bc, Lt_pad, D), jnp.float32)],   # f32 latent carry
    )

    out = pl.pallas_call(
        kernel,
        out_shape=jax.ShapeDtypeStruct((B, Lt_pad, D), x.dtype),
        grid_spec=grid_spec,
        compiler_params=pltpu.CompilerParams(
            dimension_semantics=("parallel", "arbitrary"),
            vmem_limit_bytes=vmem_limit),
    )(x_hat, lat0,
      params["nxw"], params["nxb"], params["nlw"], params["nlb"],
      wq, wk, wv, wo, params["olw"], params["olb"],
      params["ffg1"], ffw1, params["ffg2"], ffw2)

    return out[:, :Lt, :]


def init_perceiver_resampler(key, *, dim, depth, dim_head=64, heads=8,
                             num_latents=64, num_latents_mean_pooled=4,
                             max_seq_len=512, ff_mult=4):
    inner = dim_head * heads
    hidden = dim * ff_mult
    n_mp = num_latents_mean_pooled
    keys = iter(jax.random.split(key, 32))

    def nrm(shape, scale=1.0):
        return scale * jax.random.normal(next(keys), shape, jnp.float32)

    def lin(fan_in, shape):
        return jax.random.normal(next(keys), shape, jnp.float32) / math.sqrt(fan_in)

    return dict(
        heads=heads, dim_head=dim_head, n_mp=n_mp,
        pos_emb=nrm((max_seq_len, dim)),
        latents=nrm((num_latents, dim)),
        # to_latents_from_mean_pooled_seq: LayerNorm(dim) -> Linear(dim, dim*n_mp)
        mp_g=1.0 + 0.1 * nrm((1, dim)),
        mp_w=lin(dim, (dim, dim * n_mp)),
        mp_b=0.1 * nrm((dim * n_mp,)),
        # per-layer, stacked on the depth axis
        nxw=1.0 + 0.1 * nrm((depth, 1, dim)),
        nxb=0.1 * nrm((depth, 1, dim)),
        nlw=1.0 + 0.1 * nrm((depth, 1, dim)),
        nlb=0.1 * nrm((depth, 1, dim)),
        wq=lin(dim, (depth, dim, inner)),
        wkv=lin(dim, (depth, dim, 2 * inner)),
        wo=lin(inner, (depth, inner, dim)),
        olw=1.0 + 0.1 * nrm((depth, 1, dim)),
        olb=0.1 * nrm((depth, 1, dim)),
        ffg1=1.0 + 0.1 * nrm((depth, 1, dim)),
        ffw1=lin(dim, (depth, dim, hidden)),
        ffg2=1.0 + 0.1 * nrm((depth, 1, hidden)),
        ffw2=lin(hidden, (depth, hidden, dim)),
    )


# ---------------- pure-JAX f32 reference (for the in-script correctness check) ----------------
def _forward_ref(params, x):
    B, N, D = x.shape
    heads = int(params["heads"]); dh = int(params["dim_head"])
    inner = heads * dh
    depth = params["wq"].shape[0]
    L = params["latents"].shape[0]
    n_mp = int(params["n_mp"])

    pos = params["pos_emb"][:N]
    xp = x + pos[None]

    mp = jnp.mean(x, axis=1)
    mpn = _ln(mp, params["mp_g"])
    mp_lat = (mpn @ params["mp_w"] + params["mp_b"]).reshape(B, n_mp, D)
    lat = jnp.concatenate(
        [mp_lat, jnp.broadcast_to(params["latents"][None], (B, L, D))], axis=1)

    for l in range(depth):
        Lt = lat.shape[1]
        xn = _ln(xp, params["nxw"][l], params["nxb"][l])
        latn = _ln(lat, params["nlw"][l], params["nlb"][l])
        q = jnp.einsum('bnd,de->bne', latn, params["wq"][l]) * dh ** -0.5
        kv_in = jnp.concatenate([xn, latn], axis=1)
        kv = jnp.einsum('bnd,de->bne', kv_in, params["wkv"][l])
        k, v = kv[..., :inner], kv[..., inner:]
        M = kv_in.shape[1]
        q4 = q.reshape(B, Lt, heads, dh)
        k4 = k.reshape(B, M, heads, dh)
        v4 = v.reshape(B, M, heads, dh)
        sim = jnp.einsum('bihd,bjhd->bhij', q4, k4)
        attn = jax.nn.softmax(sim, axis=-1)
        o = jnp.einsum('bhij,bjhd->bihd', attn, v4).reshape(B, Lt, inner)
        o = jnp.einsum('bne,ed->bnd', o, params["wo"][l])
        o = _ln(o, params["olw"][l], params["olb"][l])
        lat = lat + o
        h0 = _ln(lat, params["ffg1"][l])
        h1 = _gelu(jnp.einsum('bnd,dh->bnh', h0, params["ffw1"][l]))
        h1 = _ln(h1, params["ffg2"][l])
        lat = lat + jnp.einsum('bnh,hd->bnd', h1, params["ffw2"][l])
    return lat


if __name__ == "__main__":
    key = jax.random.PRNGKey(0)
    B, SEQ, DIM = 2, 8, 32
    DEPTH, HEADS, DIM_HEAD = 2, 4, 16
    NUM_LATENTS, NUM_MP = 12, 4

    kx, kp = jax.random.split(key)
    x = jax.random.normal(kx, (B, SEQ, DIM), jnp.float32)
    params = init_perceiver_resampler(
        kp, dim=DIM, depth=DEPTH, dim_head=DIM_HEAD, heads=HEADS,
        num_latents=NUM_LATENTS, num_latents_mean_pooled=NUM_MP,
        max_seq_len=512, ff_mult=4)

    out = jax.block_until_ready(perceiver_resampler_forward(params, x))
    assert out.shape == (B, NUM_MP + NUM_LATENTS, DIM), out.shape

    ref = jax.block_until_ready(_forward_ref(params, x))
    err = float(jnp.max(jnp.abs(out - ref)))
    # Kernel runs all MXU matmuls with bf16 operands (f32 accumulation); the
    # reference is pure f32, so a mixed-precision tolerance is used.
    assert jnp.allclose(out, ref, atol=5e-2, rtol=5e-2), err

    print("KERNEL_OK")
</pallas_src>

<mosaic_0001>
module attributes {stable_mosaic.version = 11 : i64} {
  func.func @_resampler_kernel(%arg0: i32, %arg1: i32, %arg2: memref<2x8x32xf32, #tpu.memory_space<vmem>>, %arg3: memref<2x16x32xf32, #tpu.memory_space<vmem>>, %arg4: memref<1x1x32xf32, #tpu.memory_space<vmem>>, %arg5: memref<1x1x32xf32, #tpu.memory_space<vmem>>, %arg6: memref<1x1x32xf32, #tpu.memory_space<vmem>>, %arg7: memref<1x1x32xf32, #tpu.memory_space<vmem>>, %arg8: memref<1x32x64xbf16, #tpu.memory_space<vmem>>, %arg9: memref<1x32x64xbf16, #tpu.memory_space<vmem>>, %arg10: memref<1x32x64xbf16, #tpu.memory_space<vmem>>, %arg11: memref<1x64x32xbf16, #tpu.memory_space<vmem>>, %arg12: memref<1x1x32xf32, #tpu.memory_space<vmem>>, %arg13: memref<1x1x32xf32, #tpu.memory_space<vmem>>, %arg14: memref<1x1x32xf32, #tpu.memory_space<vmem>>, %arg15: memref<1x32x128xbf16, #tpu.memory_space<vmem>>, %arg16: memref<1x1x128xf32, #tpu.memory_space<vmem>>, %arg17: memref<1x128x32xbf16, #tpu.memory_space<vmem>>, %arg18: memref<2x16x32xf32, #tpu.memory_space<vmem>>, %arg19: memref<2x16x32xf32, #tpu.memory_space<vmem>>) attributes {dimension_semantics = [#tpu.dimension_semantics<parallel>, #tpu.dimension_semantics<arbitrary>], iteration_bounds = array<i64: 1, 2>, scalar_prefetch = 0 : i64, scratch_operands = 1 : i64, tpu.core_type = #tpu.core_type<tc>, window_params = [{transform_indices = @transform_0, window_bounds = array<i64: 2, 8, 32>}, {transform_indices = @transform_1, window_bounds = array<i64: 2, 16, 32>}, {transform_indices = @transform_2, window_bounds = array<i64: 1, 1, 32>}, {transform_indices = @transform_3, window_bounds = array<i64: 1, 1, 32>}, {transform_indices = @transform_4, window_bounds = array<i64: 1, 1, 32>}, {transform_indices = @transform_5, window_bounds = array<i64: 1, 1, 32>}, {transform_indices = @transform_6, window_bounds = array<i64: 1, 32, 64>}, {transform_indices = @transform_7, window_bounds = array<i64: 1, 32, 64>}, {transform_indices = @transform_8, window_bounds = array<i64: 1, 32, 64>}, {transform_indices = @transform_9, window_bounds = array<i64: 1, 64, 32>}, {transform_indices = @transform_10, window_bounds = array<i64: 1, 1, 32>}, {transform_indices = @transform_11, window_bounds = array<i64: 1, 1, 32>}, {transform_indices = @transform_12, window_bounds = array<i64: 1, 1, 32>}, {transform_indices = @transform_13, window_bounds = array<i64: 1, 32, 128>}, {transform_indices = @transform_14, window_bounds = array<i64: 1, 1, 128>}, {transform_indices = @transform_15, window_bounds = array<i64: 1, 128, 32>}, {transform_indices = @transform_16, window_bounds = array<i64: 2, 16, 32>}]} {
    %c0_i32 = arith.constant 0 : i32
    %0 = arith.cmpi eq, %arg1, %c0_i32 : i32
    %1 = arith.extui %0 : i1 to i32
    %c0_i32_0 = arith.constant 0 : i32
    %2 = arith.cmpi ne, %1, %c0_i32_0 : i32
    scf.if %2 {
      %c0_98 = arith.constant 0 : index
      %c0_99 = arith.constant 0 : index
      %c0_100 = arith.constant 0 : index
      %230 = vector.load %arg3[%c0_98, %c0_99, %c0_100] : memref<2x16x32xf32, #tpu.memory_space<vmem>>, vector<2x16x32xf32>
      %c0_101 = arith.constant 0 : index
      %c0_102 = arith.constant 0 : index
      %c0_103 = arith.constant 0 : index
      %231 = vector.load %arg19[%c0_101, %c0_102, %c0_103] : memref<2x16x32xf32, #tpu.memory_space<vmem>>, vector<2x16x32xf32>
      tpu.vector_store %arg19[%c0_101, %c0_102, %c0_103], %230 {strides = array<i32>} : memref<2x16x32xf32, #tpu.memory_space<vmem>>, vector<2x16x32xf32>,
    } else {
    }
    %c0 = arith.constant 0 : index
    %c0_1 = arith.constant 0 : index
    %c0_2 = arith.constant 0 : index
    %3 = vector.load %arg19[%c0, %c0_1, %c0_2] : memref<2x16x32xf32, #tpu.memory_space<vmem>>, vector<2x16x32xf32>
    %c0_3 = arith.constant 0 : index
    %c0_4 = arith.constant 0 : index
    %c0_5 = arith.constant 0 : index
    %4 = vector.load %arg2[%c0_3, %c0_4, %c0_5] : memref<2x8x32xf32, #tpu.memory_space<vmem>>, vector<2x8x32xf32>
    %c0_6 = arith.constant 0 : index
    %c0_7 = arith.constant 0 : index
    %c0_8 = arith.constant 0 : index
    %5 = vector.load %arg4[%c0_6, %c0_7, %c0_8] : memref<1x1x32xf32, #tpu.memory_space<vmem>>, vector<1x1x32xf32>
    %6 = vector.shape_cast %5 : vector<1x1x32xf32> to vector<1x32xf32>
    %7 = vector.shape_cast %6 : vector<1x32xf32> to vector<1x1x32xf32>
    %8 = vector.broadcast %7 : vector<1x1x32xf32> to vector<2x8x32xf32>
    %9 = arith.mulf %4, %8 : vector<2x8x32xf32>
    %c0_9 = arith.constant 0 : index
    %c0_10 = arith.constant 0 : index
    %c0_11 = arith.constant 0 : index
    %10 = vector.load %arg5[%c0_9, %c0_10, %c0_11] : memref<1x1x32xf32, #tpu.memory_space<vmem>>, vector<1x1x32xf32>
    %11 = vector.shape_cast %10 : vector<1x1x32xf32> to vector<1x32xf32>
    %12 = vector.shape_cast %11 : vector<1x32xf32> to vector<1x1x32xf32>
    %13 = vector.broadcast %12 : vector<1x1x32xf32> to vector<2x8x32xf32>
    %14 = arith.addf %9, %13 : vector<2x8x32xf32>
    %c0_12 = arith.constant 0 : index
    %c0_13 = arith.constant 0 : index
    %c0_14 = arith.constant 0 : index
    %15 = vector.load %arg6[%c0_12, %c0_13, %c0_14] : memref<1x1x32xf32, #tpu.memory_space<vmem>>, vector<1x1x32xf32>
    %16 = vector.shape_cast %15 : vector<1x1x32xf32> to vector<1x32xf32>
    %c0_15 = arith.constant 0 : index
    %c0_16 = arith.constant 0 : index
    %c0_17 = arith.constant 0 : index
    %17 = vector.load %arg7[%c0_15, %c0_16, %c0_17] : memref<1x1x32xf32, #tpu.memory_space<vmem>>, vector<1x1x32xf32>
    %18 = vector.shape_cast %17 : vector<1x1x32xf32> to vector<1x32xf32>
    %cst = arith.constant dense<0.000000e+00> : vector<2x16xf32>
    %19 = vector.multi_reduction <add>, %3, %cst [2] : vector<2x16x32xf32> to vector<2x16xf32>
    %20 = vector.shape_cast %19 : vector<2x16xf32> to vector<2x16x1xf32>
    %cst_18 = arith.constant 3.200000e+01 : f32
    %21 = vector.broadcast %cst_18 : f32 to vector<2x16x1xf32>
    %22 = arith.divf %20, %21 : vector<2x16x1xf32>
    %23 = vector.broadcast %22 : vector<2x16x1xf32> to vector<2x16x32xf32>
    %24 = arith.subf %3, %23 : vector<2x16x32xf32>
    %25 = arith.mulf %24, %24 : vector<2x16x32xf32>
    %cst_19 = arith.constant dense<0.000000e+00> : vector<2x16xf32>
    %26 = vector.multi_reduction <add>, %25, %cst_19 [2] : vector<2x16x32xf32> to vector<2x16xf32>
    %27 = vector.shape_cast %26 : vector<2x16xf32> to vector<2x16x1xf32>
    %cst_20 = arith.constant 3.200000e+01 : f32
    %28 = vector.broadcast %cst_20 : f32 to vector<2x16x1xf32>
    %29 = arith.divf %27, %28 : vector<2x16x1xf32>
    %cst_21 = arith.constant 9.99999974E-6 : f32
    %30 = vector.broadcast %cst_21 : f32 to vector<2x16x1xf32>
    %31 = arith.addf %29, %30 : vector<2x16x1xf32>
    %32 = math.rsqrt %31 : vector<2x16x1xf32>
    %33 = vector.broadcast %32 : vector<2x16x1xf32> to vector<2x16x32xf32>
    %34 = arith.mulf %24, %33 : vector<2x16x32xf32>
    %35 = vector.shape_cast %16 : vector<1x32xf32> to vector<1x1x32xf32>
    %36 = vector.broadcast %35 : vector<1x1x32xf32> to vector<2x16x32xf32>
    %37 = arith.mulf %34, %36 : vector<2x16x32xf32>
    %38 = vector.shape_cast %18 : vector<1x32xf32> to vector<1x1x32xf32>
    %39 = vector.broadcast %38 : vector<1x1x32xf32> to vector<2x16x32xf32>
    %40 = arith.addf %37, %39 : vector<2x16x32xf32>
    %41 = tpu.concatenate %14, %40 in 1 : vector<2x8x32xf32>, vector<2x16x32xf32> -> vector<2x24x32xf32>
    %42 = vector.shape_cast %40 : vector<2x16x32xf32> to vector<32x32xf32>
    %43 = arith.truncf %42 : vector<32x32xf32> to vector<32x32xbf16>
    %44 = vector.shape_cast %41 : vector<2x24x32xf32> to vector<48x32xf32>
    %45 = arith.truncf %44 : vector<48x32xf32> to vector<48x32xbf16>
    %c0_22 = arith.constant 0 : index
    %c0_23 = arith.constant 0 : index
    %c0_24 = arith.constant 0 : index
    %46 = vector.load %arg8[%c0_22, %c0_23, %c0_24] : memref<1x32x64xbf16, #tpu.memory_space<vmem>>, vector<1x32x64xbf16>
    %47 = vector.shape_cast %46 : vector<1x32x64xbf16> to vector<32x64xbf16>
    %cst_25 = arith.constant dense<0.000000e+00> : vector<32x64xf32>
    %48 = tpu.matmul %43, %47, %cst_25 {dimension_numbers = #tpu.dot_dimension_numbers<[1], [0], [0], [1], [0, 0, 1, 1], [], []>} : vector<32x32xbf16>, vector<32x64xbf16>, vector<32x64xf32> -> vector<32x64xf32>
    %cst_26 = arith.constant 2.500000e-01 : f32
    %49 = vector.broadcast %cst_26 : f32 to vector<32x64xf32>
    %50 = arith.mulf %48, %49 : vector<32x64xf32>
    %51 = vector.shape_cast %50 : vector<32x64xf32> to vector<2x16x64xf32>
    %52 = arith.truncf %51 : vector<2x16x64xf32> to vector<2x16x64xbf16>
    %c0_27 = arith.constant 0 : index
    %c0_28 = arith.constant 0 : index
    %c0_29 = arith.constant 0 : index
    %53 = vector.load %arg9[%c0_27, %c0_28, %c0_29] : memref<1x32x64xbf16, #tpu.memory_space<vmem>>, vector<1x32x64xbf16>
    %54 = vector.shape_cast %53 : vector<1x32x64xbf16> to vector<32x64xbf16>
    %cst_30 = arith.constant dense<0.000000e+00> : vector<48x64xf32>
    %55 = tpu.matmul %45, %54, %cst_30 {dimension_numbers = #tpu.dot_dimension_numbers<[1], [0], [0], [1], [0, 0, 1, 1], [], []>} : vector<48x32xbf16>, vector<32x64xbf16>, vector<48x64xf32> -> vector<48x64xf32>
    %56 = vector.shape_cast %55 : vector<48x64xf32> to vector<2x24x64xf32>
    %57 = arith.truncf %56 : vector<2x24x64xf32> to vector<2x24x64xbf16>
    %c0_31 = arith.constant 0 : index
    %c0_32 = arith.constant 0 : index
    %c0_33 = arith.constant 0 : index
    %58 = vector.load %arg10[%c0_31, %c0_32, %c0_33] : memref<1x32x64xbf16, #tpu.memory_space<vmem>>, vector<1x32x64xbf16>
    %59 = vector.shape_cast %58 : vector<1x32x64xbf16> to vector<32x64xbf16>
    %cst_34 = arith.constant dense<0.000000e+00> : vector<48x64xf32>
    %60 = tpu.matmul %45, %59, %cst_34 {dimension_numbers = #tpu.dot_dimension_numbers<[1], [0], [0], [1], [0, 0, 1, 1], [], []>} : vector<48x32xbf16>, vector<32x64xbf16>, vector<48x64xf32> -> vector<48x64xf32>
    %61 = vector.shape_cast %60 : vector<48x64xf32> to vector<2x24x64xf32>
    %62 = arith.truncf %61 : vector<2x24x64xf32> to vector<2x24x64xbf16>
    %63 = vector.extract_strided_slice %52 {offsets = [0, 0, 0], sizes = [2, 16, 16], strides = [1, 1, 1]} : vector<2x16x64xbf16> to vector<2x16x16xbf16>
    %64 = vector.extract_strided_slice %57 {offsets = [0, 0, 0], sizes = [2, 24, 16], strides = [1, 1, 1]} : vector<2x24x64xbf16> to vector<2x24x16xbf16>
    %65 = vector.extract_strided_slice %62 {offsets = [0, 0, 0], sizes = [2, 24, 16], strides = [1, 1, 1]} : vector<2x24x64xbf16> to vector<2x24x16xbf16>
    "tpu.trace_start"() <{level = 10 : i32, message = "bqd,bkd->bqk"}> : () -> ()
    %cst_35 = arith.constant dense<0.000000e+00> : vector<2x16x24xf32>
    %66 = tpu.matmul %63, %64, %cst_35 {dimension_numbers = #tpu.dot_dimension_numbers<[2], [2], [1], [1], [0, 0, 0, 1, 1, 1], [0], [0]>} : vector<2x16x16xbf16>, vector<2x24x16xbf16>, vector<2x16x24xf32> -> vector<2x16x24xf32>
    "tpu.trace_stop"() : () -> ()
    %cst_36 = arith.constant dense<0xFF800000> : vector<2x16xf32>
    %67 = vector.multi_reduction <maximumf>, %66, %cst_36 [2] : vector<2x16x24xf32> to vector<2x16xf32>
    %68 = vector.shape_cast %67 : vector<2x16xf32> to vector<2x16x1xf32>
    %69 = vector.broadcast %68 : vector<2x16x1xf32> to vector<2x16x24xf32>
    %70 = arith.subf %66, %69 : vector<2x16x24xf32>
    %71 = math.exp %70 : vector<2x16x24xf32>
    %cst_37 = arith.constant dense<0.000000e+00> : vector<2x16xf32>
    %72 = vector.multi_reduction <add>, %71, %cst_37 [2] : vector<2x16x24xf32> to vector<2x16xf32>
    %73 = vector.shape_cast %72 : vector<2x16xf32> to vector<2x16x1xf32>
    %74 = tpu.reciprocal %73 {approx = true} : vector<2x16x1xf32> -> vector<2x16x1xf32>
    %75 = vector.broadcast %74 : vector<2x16x1xf32> to vector<2x16x24xf32>
    %76 = arith.mulf %71, %75 : vector<2x16x24xf32>
    %77 = arith.truncf %76 : vector<2x16x24xf32> to vector<2x16x24xbf16>
    "tpu.trace_start"() <{level = 10 : i32, message = "bqk,bkd->bqd"}> : () -> ()
    %cst_38 = arith.constant dense<0.000000e+00> : vector<2x16x16xf32>
    %78 = tpu.matmul %77, %65, %cst_38 {dimension_numbers = #tpu.dot_dimension_numbers<[2], [1], [1], [2], [0, 0, 0, 1, 1, 2], [0], [0]>} : vector<2x16x24xbf16>, vector<2x24x16xbf16>, vector<2x16x16xf32> -> vector<2x16x16xf32>
    "tpu.trace_stop"() : () -> ()
    %79 = vector.extract_strided_slice %52 {offsets = [0, 0, 16], sizes = [2, 16, 16], strides = [1, 1, 1]} : vector<2x16x64xbf16> to vector<2x16x16xbf16>
    %80 = vector.extract_strided_slice %57 {offsets = [0, 0, 16], sizes = [2, 24, 16], strides = [1, 1, 1]} : vector<2x24x64xbf16> to vector<2x24x16xbf16>
    %81 = vector.extract_strided_slice %62 {offsets = [0, 0, 16], sizes = [2, 24, 16], strides = [1, 1, 1]} : vector<2x24x64xbf16> to vector<2x24x16xbf16>
    "tpu.trace_start"() <{level = 10 : i32, message = "bqd,bkd->bqk"}> : () -> ()
    %cst_39 = arith.constant dense<0.000000e+00> : vector<2x16x24xf32>
    %82 = tpu.matmul %79, %80, %cst_39 {dimension_numbers = #tpu.dot_dimension_numbers<[2], [2], [1], [1], [0, 0, 0, 1, 1, 1], [0], [0]>} : vector<2x16x16xbf16>, vector<2x24x16xbf16>, vector<2x16x24xf32> -> vector<2x16x24xf32>
    "tpu.trace_stop"() : () -> ()
    %cst_40 = arith.constant dense<0xFF800000> : vector<2x16xf32>
    %83 = vector.multi_reduction <maximumf>, %82, %cst_40 [2] : vector<2x16x24xf32> to vector<2x16xf32>
    %84 = vector.shape_cast %83 : vector<2x16xf32> to vector<2x16x1xf32>
    %85 = vector.broadcast %84 : vector<2x16x1xf32> to vector<2x16x24xf32>
    %86 = arith.subf %82, %85 : vector<2x16x24xf32>
    %87 = math.exp %86 : vector<2x16x24xf32>
    %cst_41 = arith.constant dense<0.000000e+00> : vector<2x16xf32>
    %88 = vector.multi_reduction <add>, %87, %cst_41 [2] : vector<2x16x24xf32> to vector<2x16xf32>
    %89 = vector.shape_cast %88 : vector<2x16xf32> to vector<2x16x1xf32>
    %90 = tpu.reciprocal %89 {approx = true} : vector<2x16x1xf32> -> vector<2x16x1xf32>
    %91 = vector.broadcast %90 : vector<2x16x1xf32> to vector<2x16x24xf32>
    %92 = arith.mulf %87, %91 : vector<2x16x24xf32>
    %93 = arith.truncf %92 : vector<2x16x24xf32> to vector<2x16x24xbf16>
    "tpu.trace_start"() <{level = 10 : i32, message = "bqk,bkd->bqd"}> : () -> ()
    %cst_42 = arith.constant dense<0.000000e+00> : vector<2x16x16xf32>
    %94 = tpu.matmul %93, %81, %cst_42 {dimension_numbers = #tpu.dot_dimension_numbers<[2], [1], [1], [2], [0, 0, 0, 1, 1, 2], [0], [0]>} : vector<2x16x24xbf16>, vector<2x24x16xbf16>, vector<2x16x16xf32> -> vector<2x16x16xf32>
    "tpu.trace_stop"() : () -> ()
    %95 = vector.extract_strided_slice %52 {offsets = [0, 0, 32], sizes = [2, 16, 16], strides = [1, 1, 1]} : vector<2x16x64xbf16> to vector<2x16x16xbf16>
    %96 = vector.extract_strided_slice %57 {offsets = [0, 0, 32], sizes = [2, 24, 16], strides = [1, 1, 1]} : vector<2x24x64xbf16> to vector<2x24x16xbf16>
    %97 = vector.extract_strided_slice %62 {offsets = [0, 0, 32], sizes = [2, 24, 16], strides = [1, 1, 1]} : vector<2x24x64xbf16> to vector<2x24x16xbf16>
    "tpu.trace_start"() <{level = 10 : i32, message = "bqd,bkd->bqk"}> : () -> ()
    %cst_43 = arith.constant dense<0.000000e+00> : vector<2x16x24xf32>
    %98 = tpu.matmul %95, %96, %cst_43 {dimension_numbers = #tpu.dot_dimension_numbers<[2], [2], [1], [1], [0, 0, 0, 1, 1, 1], [0], [0]>} : vector<2x16x16xbf16>, vector<2x24x16xbf16>, vector<2x16x24xf32> -> vector<2x16x24xf32>
    "tpu.trace_stop"() : () -> ()
    %cst_44 = arith.constant dense<0xFF800000> : vector<2x16xf32>
    %99 = vector.multi_reduction <maximumf>, %98, %cst_44 [2] : vector<2x16x24xf32> to vector<2x16xf32>
    %100 = vector.shape_cast %99 : vector<2x16xf32> to vector<2x16x1xf32>
    %101 = vector.broadcast %100 : vector<2x16x1xf32> to vector<2x16x24xf32>
    %102 = arith.subf %98, %101 : vector<2x16x24xf32>
    %103 = math.exp %102 : vector<2x16x24xf32>
    %cst_45 = arith.constant dense<0.000000e+00> : vector<2x16xf32>
    %104 = vector.multi_reduction <add>, %103, %cst_45 [2] : vector<2x16x24xf32> to vector<2x16xf32>
    %105 = vector.shape_cast %104 : vector<2x16xf32> to vector<2x16x1xf32>
    %106 = tpu.reciprocal %105 {approx = true} : vector<2x16x1xf32> -> vector<2x16x1xf32>
    %107 = vector.broadcast %106 : vector<2x16x1xf32> to vector<2x16x24xf32>
    %108 = arith.mulf %103, %107 : vector<2x16x24xf32>
    %109 = arith.truncf %108 : vector<2x16x24xf32> to vector<2x16x24xbf16>
    "tpu.trace_start"() <{level = 10 : i32, message = "bqk,bkd->bqd"}> : () -> ()
    %cst_46 = arith.constant dense<0.000000e+00> : vector<2x16x16xf32>
    %110 = tpu.matmul %109, %97, %cst_46 {dimension_numbers = #tpu.dot_dimension_numbers<[2], [1], [1], [2], [0, 0, 0, 1, 1, 2], [0], [0]>} : vector<2x16x24xbf16>, vector<2x24x16xbf16>, vector<2x16x16xf32> -> vector<2x16x16xf32>
    "tpu.trace_stop"() : () -> ()
    %111 = vector.extract_strided_slice %52 {offsets = [0, 0, 48], sizes = [2, 16, 16], strides = [1, 1, 1]} : vector<2x16x64xbf16> to vector<2x16x16xbf16>
    %112 = vector.extract_strided_slice %57 {offsets = [0, 0, 48], sizes = [2, 24, 16], strides = [1, 1, 1]} : vector<2x24x64xbf16> to vector<2x24x16xbf16>
    %113 = vector.extract_strided_slice %62 {offsets = [0, 0, 48], sizes = [2, 24, 16], strides = [1, 1, 1]} : vector<2x24x64xbf16> to vector<2x24x16xbf16>
    "tpu.trace_start"() <{level = 10 : i32, message = "bqd,bkd->bqk"}> : () -> ()
    %cst_47 = arith.constant dense<0.000000e+00> : vector<2x16x24xf32>
    %114 = tpu.matmul %111, %112, %cst_47 {dimension_numbers = #tpu.dot_dimension_numbers<[2], [2], [1], [1], [0, 0, 0, 1, 1, 1], [0], [0]>} : vector<2x16x16xbf16>, vector<2x24x16xbf16>, vector<2x16x24xf32> -> vector<2x16x24xf32>
    "tpu.trace_stop"() : () -> ()
    %cst_48 = arith.constant dense<0xFF800000> : vector<2x16xf32>
    %115 = vector.multi_reduction <maximumf>, %114, %cst_48 [2] : vector<2x16x24xf32> to vector<2x16xf32>
    %116 = vector.shape_cast %115 : vector<2x16xf32> to vector<2x16x1xf32>
    %117 = vector.broadcast %116 : vector<2x16x1xf32> to vector<2x16x24xf32>
    %118 = arith.subf %114, %117 : vector<2x16x24xf32>
    %119 = math.exp %118 : vector<2x16x24xf32>
    %cst_49 = arith.constant dense<0.000000e+00> : vector<2x16xf32>
    %120 = vector.multi_reduction <add>, %119, %cst_49 [2] : vector<2x16x24xf32> to vector<2x16xf32>
    %121 = vector.shape_cast %120 : vector<2x16xf32> to vector<2x16x1xf32>
    %122 = tpu.reciprocal %121 {approx = true} : vector<2x16x1xf32> -> vector<2x16x1xf32>
    %123 = vector.broadcast %122 : vector<2x16x1xf32> to vector<2x16x24xf32>
    %124 = arith.mulf %119, %123 : vector<2x16x24xf32>
    %125 = arith.truncf %124 : vector<2x16x24xf32> to vector<2x16x24xbf16>
    "tpu.trace_start"() <{level = 10 : i32, message = "bqk,bkd->bqd"}> : () -> ()
    %cst_50 = arith.constant dense<0.000000e+00> : vector<2x16x16xf32>
    %126 = tpu.matmul %125, %113, %cst_50 {dimension_numbers = #tpu.dot_dimension_numbers<[2], [1], [1], [2], [0, 0, 0, 1, 1, 2], [0], [0]>} : vector<2x16x24xbf16>, vector<2x24x16xbf16>, vector<2x16x16xf32> -> vector<2x16x16xf32>
    "tpu.trace_stop"() : () -> ()
    %127 = tpu.concatenate %78, %94, %110, %126 in 2 : vector<2x16x16xf32>, vector<2x16x16xf32>, vector<2x16x16xf32>, vector<2x16x16xf32> -> vector<2x16x64xf32>
    %128 = vector.shape_cast %127 : vector<2x16x64xf32> to vector<32x64xf32>
    %129 = arith.truncf %128 : vector<32x64xf32> to vector<32x64xbf16>
    %c0_51 = arith.constant 0 : index
    %c0_52 = arith.constant 0 : index
    %c0_53 = arith.constant 0 : index
    %130 = vector.load %arg11[%c0_51, %c0_52, %c0_53] : memref<1x64x32xbf16, #tpu.memory_space<vmem>>, vector<1x64x32xbf16>
    %131 = vector.shape_cast %130 : vector<1x64x32xbf16> to vector<64x32xbf16>
    %cst_54 = arith.constant dense<0.000000e+00> : vector<32x32xf32>
    %132 = tpu.matmul %129, %131, %cst_54 {dimension_numbers = #tpu.dot_dimension_numbers<[1], [0], [0], [1], [0, 0, 1, 1], [], []>} : vector<32x64xbf16>, vector<64x32xbf16>, vector<32x32xf32> -> vector<32x32xf32>
    %133 = vector.shape_cast %132 : vector<32x32xf32> to vector<2x16x32xf32>
    %c0_55 = arith.constant 0 : index
    %c0_56 = arith.constant 0 : index
    %c0_57 = arith.constant 0 : index
    %134 = vector.load %arg12[%c0_55, %c0_56, %c0_57] : memref<1x1x32xf32, #tpu.memory_space<vmem>>, vector<1x1x32xf32>
    %135 = vector.shape_cast %134 : vector<1x1x32xf32> to vector<1x32xf32>
    %c0_58 = arith.constant 0 : index
    %c0_59 = arith.constant 0 : index
    %c0_60 = arith.constant 0 : index
    %136 = vector.load %arg13[%c0_58, %c0_59, %c0_60] : memref<1x1x32xf32, #tpu.memory_space<vmem>>, vector<1x1x32xf32>
    %137 = vector.shape_cast %136 : vector<1x1x32xf32> to vector<1x32xf32>
    %cst_61 = arith.constant dense<0.000000e+00> : vector<2x16xf32>
    %138 = vector.multi_reduction <add>, %133, %cst_61 [2] : vector<2x16x32xf32> to vector<2x16xf32>
    %139 = vector.shape_cast %138 : vector<2x16xf32> to vector<2x16x1xf32>
    %cst_62 = arith.constant 3.200000e+01 : f32
    %140 = vector.broadcast %cst_62 : f32 to vector<2x16x1xf32>
    %141 = arith.divf %139, %140 : vector<2x16x1xf32>
    %142 = vector.broadcast %141 : vector<2x16x1xf32> to vector<2x16x32xf32>
    %143 = arith.subf %133, %142 : vector<2x16x32xf32>
    %144 = arith.mulf %143, %143 : vector<2x16x32xf32>
    %cst_63 = arith.constant dense<0.000000e+00> : vector<2x16xf32>
    %145 = vector.multi_reduction <add>, %144, %cst_63 [2] : vector<2x16x32xf32> to vector<2x16xf32>
    %146 = vector.shape_cast %145 : vector<2x16xf32> to vector<2x16x1xf32>
    %cst_64 = arith.constant 3.200000e+01 : f32
    %147 = vector.broadcast %cst_64 : f32 to vector<2x16x1xf32>
    %148 = arith.divf %146, %147 : vector<2x16x1xf32>
    %cst_65 = arith.constant 9.99999974E-6 : f32
    %149 = vector.broadcast %cst_65 : f32 to vector<2x16x1xf32>
    %150 = arith.addf %148, %149 : vector<2x16x1xf32>
    %151 = math.rsqrt %150 : vector<2x16x1xf32>
    %152 = vector.broadcast %151 : vector<2x16x1xf32> to vector<2x16x32xf32>
    %153 = arith.mulf %143, %152 : vector<2x16x32xf32>
    %154 = vector.shape_cast %135 : vector<1x32xf32> to vector<1x1x32xf32>
    %155 = vector.broadcast %154 : vector<1x1x32xf32> to vector<2x16x32xf32>
    %156 = arith.mulf %153, %155 : vector<2x16x32xf32>
    %157 = vector.shape_cast %137 : vector<1x32xf32> to vector<1x1x32xf32>
    %158 = vector.broadcast %157 : vector<1x1x32xf32> to vector<2x16x32xf32>
    %159 = arith.addf %156, %158 : vector<2x16x32xf32>
    %160 = arith.addf %3, %159 : vector<2x16x32xf32>
    %c0_66 = arith.constant 0 : index
    %c0_67 = arith.constant 0 : index
    %c0_68 = arith.constant 0 : index
    %161 = vector.load %arg14[%c0_66, %c0_67, %c0_68] : memref<1x1x32xf32, #tpu.memory_space<vmem>>, vector<1x1x32xf32>
    %162 = vector.shape_cast %161 : vector<1x1x32xf32> to vector<1x32xf32>
    %cst_69 = arith.constant dense<0.000000e+00> : vector<2x16xf32>
    %163 = vector.multi_reduction <add>, %160, %cst_69 [2] : vector<2x16x32xf32> to vector<2x16xf32>
    %164 = vector.shape_cast %163 : vector<2x16xf32> to vector<2x16x1xf32>
    %cst_70 = arith.constant 3.200000e+01 : f32
    %165 = vector.broadcast %cst_70 : f32 to vector<2x16x1xf32>
    %166 = arith.divf %164, %165 : vector<2x16x1xf32>
    %167 = vector.broadcast %166 : vector<2x16x1xf32> to vector<2x16x32xf32>
    %168 = arith.subf %160, %167 : vector<2x16x32xf32>
    %169 = arith.mulf %168, %168 : vector<2x16x32xf32>
    %cst_71 = arith.constant dense<0.000000e+00> : vector<2x16xf32>
    %170 = vector.multi_reduction <add>, %169, %cst_71 [2] : vector<2x16x32xf32> to vector<2x16xf32>
    %171 = vector.shape_cast %170 : vector<2x16xf32> to vector<2x16x1xf32>
    %cst_72 = arith.constant 3.200000e+01 : f32
    %172 = vector.broadcast %cst_72 : f32 to vector<2x16x1xf32>
    %173 = arith.divf %171, %172 : vector<2x16x1xf32>
    %cst_73 = arith.constant 9.99999974E-6 : f32
    %174 = vector.broadcast %cst_73 : f32 to vector<2x16x1xf32>
    %175 = arith.addf %173, %174 : vector<2x16x1xf32>
    %176 = math.rsqrt %175 : vector<2x16x1xf32>
    %177 = vector.broadcast %176 : vector<2x16x1xf32> to vector<2x16x32xf32>
    %178 = arith.mulf %168, %177 : vector<2x16x32xf32>
    %179 = vector.shape_cast %162 : vector<1x32xf32> to vector<1x1x32xf32>
    %180 = vector.broadcast %179 : vector<1x1x32xf32> to vector<2x16x32xf32>
    %181 = arith.mulf %178, %180 : vector<2x16x32xf32>
    %182 = vector.shape_cast %181 : vector<2x16x32xf32> to vector<32x32xf32>
    %183 = arith.truncf %182 : vector<32x32xf32> to vector<32x32xbf16>
    %c0_74 = arith.constant 0 : index
    %c0_75 = arith.constant 0 : index
    %c0_76 = arith.constant 0 : index
    %184 = vector.load %arg15[%c0_74, %c0_75, %c0_76] : memref<1x32x128xbf16, #tpu.memory_space<vmem>>, vector<1x32x128xbf16>
    %185 = vector.shape_cast %184 : vector<1x32x128xbf16> to vector<32x128xbf16>
    %cst_77 = arith.constant dense<0.000000e+00> : vector<32x128xf32>
    %186 = tpu.matmul %183, %185, %cst_77 {dimension_numbers = #tpu.dot_dimension_numbers<[1], [0], [0], [1], [0, 0, 1, 1], [], []>} : vector<32x32xbf16>, vector<32x128xbf16>, vector<32x128xf32> -> vector<32x128xf32>
    %cst_78 = arith.constant 5.000000e-01 : f32
    %187 = vector.broadcast %cst_78 : f32 to vector<32x128xf32>
    %188 = arith.mulf %187, %186 : vector<32x128xf32>
    %cst_79 = arith.constant 4.471500e-02 : f32
    %189 = vector.broadcast %cst_79 : f32 to vector<32x128xf32>
    %190 = arith.mulf %189, %186 : vector<32x128xf32>
    %191 = arith.mulf %190, %186 : vector<32x128xf32>
    %192 = arith.mulf %191, %186 : vector<32x128xf32>
    %193 = arith.addf %186, %192 : vector<32x128xf32>
    %cst_80 = arith.constant 0.797884583 : f32
    %194 = vector.broadcast %cst_80 : f32 to vector<32x128xf32>
    %195 = arith.mulf %194, %193 : vector<32x128xf32>
    %196 = math.tanh %195 : vector<32x128xf32>
    %cst_81 = arith.constant 1.000000e+00 : f32
    %197 = vector.broadcast %cst_81 : f32 to vector<32x128xf32>
    %198 = arith.addf %197, %196 : vector<32x128xf32>
    %199 = arith.mulf %188, %198 : vector<32x128xf32>
    %c0_82 = arith.constant 0 : index
    %c0_83 = arith.constant 0 : index
    %c0_84 = arith.constant 0 : index
    %200 = vector.load %arg16[%c0_82, %c0_83, %c0_84] : memref<1x1x128xf32, #tpu.memory_space<vmem>>, vector<1x1x128xf32>
    %201 = vector.shape_cast %200 : vector<1x1x128xf32> to vector<1x128xf32>
    %cst_85 = arith.constant dense<0.000000e+00> : vector<32xf32>
    %202 = vector.multi_reduction <add>, %199, %cst_85 [1] : vector<32x128xf32> to vector<32xf32>
    %203 = vector.shape_cast %202 : vector<32xf32> to vector<32x1xf32>
    %cst_86 = arith.constant 1.280000e+02 : f32
    %204 = vector.broadcast %cst_86 : f32 to vector<32x1xf32>
    %205 = arith.divf %203, %204 : vector<32x1xf32>
    %206 = vector.broadcast %205 : vector<32x1xf32> to vector<32x128xf32>
    %207 = arith.subf %199, %206 : vector<32x128xf32>
    %208 = arith.mulf %207, %207 : vector<32x128xf32>
    %cst_87 = arith.constant dense<0.000000e+00> : vector<32xf32>
    %209 = vector.multi_reduction <add>, %208, %cst_87 [1] : vector<32x128xf32> to vector<32xf32>
    %210 = vector.shape_cast %209 : vector<32xf32> to vector<32x1xf32>
    %cst_88 = arith.constant 1.280000e+02 : f32
    %211 = vector.broadcast %cst_88 : f32 to vector<32x1xf32>
    %212 = arith.divf %210, %211 : vector<32x1xf32>
    %cst_89 = arith.constant 9.99999974E-6 : f32
    %213 = vector.broadcast %cst_89 : f32 to vector<32x1xf32>
    %214 = arith.addf %212, %213 : vector<32x1xf32>
    %215 = math.rsqrt %214 : vector<32x1xf32>
    %216 = vector.broadcast %215 : vector<32x1xf32> to vector<32x128xf32>
    %217 = arith.mulf %207, %216 : vector<32x128xf32>
    %218 = vector.broadcast %201 : vector<1x128xf32> to vector<32x128xf32>
    %219 = arith.mulf %217, %218 : vector<32x128xf32>
    %220 = arith.truncf %219 : vector<32x128xf32> to vector<32x128xbf16>
    %c0_90 = arith.constant 0 : index
    %c0_91 = arith.constant 0 : index
    %c0_92 = arith.constant 0 : index
    %221 = vector.load %arg17[%c0_90, %c0_91, %c0_92] : memref<1x128x32xbf16, #tpu.memory_space<vmem>>, vector<1x128x32xbf16>
    %222 = vector.shape_cast %221 : vector<1x128x32xbf16> to vector<128x32xbf16>
    %cst_93 = arith.constant dense<0.000000e+00> : vector<32x32xf32>
    %223 = tpu.matmul %220, %222, %cst_93 {dimension_numbers = #tpu.dot_dimension_numbers<[1], [0], [0], [1], [0, 0, 1, 1], [], []>} : vector<32x128xbf16>, vector<128x32xbf16>, vector<32x32xf32> -> vector<32x32xf32>
    %224 = vector.shape_cast %223 : vector<32x32xf32> to vector<2x16x32xf32>
    %225 = arith.addf %160, %224 : vector<2x16x32xf32>
    %c0_94 = arith.constant 0 : index
    %c0_95 = arith.constant 0 : index
    %c0_96 = arith.constant 0 : index
    %226 = vector.load %arg19[%c0_94, %c0_95, %c0_96] : memref<2x16x32xf32, #tpu.memory_space<vmem>>, vector<2x16x32xf32>
    tpu.vector_store %arg19[%c0_94, %c0_95, %c0_96], %225 {strides = array<i32>} : memref<2x16x32xf32, #tpu.memory_space<vmem>>, vector<2x16x32xf32>,
    %c1_i32 = arith.constant 1 : i32
    %227 = arith.cmpi eq, %arg1, %c1_i32 : i32
    %228 = arith.extui %227 : i1 to i32
    %c0_i32_97 = arith.constant 0 : i32
    %229 = arith.cmpi ne, %228, %c0_i32_97 : i32
    scf.if %229 {
      %c0_98 = arith.constant 0 : index
      %c0_99 = arith.constant 0 : index
      %c0_100 = arith.constant 0 : index
      %230 = vector.load %arg18[%c0_98, %c0_99, %c0_100] : memref<2x16x32xf32, #tpu.memory_space<vmem>>, vector<2x16x32xf32>
      tpu.vector_store %arg18[%c0_98, %c0_99, %c0_100], %225 {strides = array<i32>} : memref<2x16x32xf32, #tpu.memory_space<vmem>>, vector<2x16x32xf32>,
    } else {
    }
    return
  }
  func.func @transform_0(%arg0: i32, %arg1: i32) -> (i32, i32, i32) {
    %c0_i32 = arith.constant 0 : i32
    %c0_i32_0 = arith.constant 0 : i32
    %c0_i32_1 = arith.constant 0 : i32
    return %arg0, %c0_i32, %c0_i32_0 : i32, i32, i32
  }
  func.func @transform_1(%arg0: i32, %arg1: i32) -> (i32, i32, i32) {
    %c0_i32 = arith.constant 0 : i32
    %c0_i32_0 = arith.constant 0 : i32
    %c0_i32_1 = arith.constant 0 : i32
    return %arg0, %c0_i32, %c0_i32_0 : i32, i32, i32
  }
  func.func @transform_2(%arg0: i32, %arg1: i32) -> (i32, i32, i32) {
    %c0_i32 = arith.constant 0 : i32
    %c0_i32_0 = arith.constant 0 : i32
    %c0_i32_1 = arith.constant 0 : i32
    return %arg1, %c0_i32, %c0_i32_0 : i32, i32, i32
  }
  func.func @transform_3(%arg0: i32, %arg1: i32) -> (i32, i32, i32) {
    %c0_i32 = arith.constant 0 : i32
    %c0_i32_0 = arith.constant 0 : i32
    %c0_i32_1 = arith.constant 0 : i32
    return %arg1, %c0_i32, %c0_i32_0 : i32, i32, i32
  }
  func.func @transform_4(%arg0: i32, %arg1: i32) -> (i32, i32, i32) {
    %c0_i32 = arith.constant 0 : i32
    %c0_i32_0 = arith.constant 0 : i32
    %c0_i32_1 = arith.constant 0 : i32
    return %arg1, %c0_i32, %c0_i32_0 : i32, i32, i32
  }
  func.func @transform_5(%arg0: i32, %arg1: i32) -> (i32, i32, i32) {
    %c0_i32 = arith.constant 0 : i32
    %c0_i32_0 = arith.constant 0 : i32
    %c0_i32_1 = arith.constant 0 : i32
    return %arg1, %c0_i32, %c0_i32_0 : i32, i32, i32
  }
  func.func @transform_6(%arg0: i32, %arg1: i32) -> (i32, i32, i32) {
    %c0_i32 = arith.constant 0 : i32
    %c0_i32_0 = arith.constant 0 : i32
    %c0_i32_1 = arith.constant 0 : i32
    return %arg1, %c0_i32, %c0_i32_0 : i32, i32, i32
  }
  func.func @transform_7(%arg0: i32, %arg1: i32) -> (i32, i32, i32) {
    %c0_i32 = arith.constant 0 : i32
    %c0_i32_0 = arith.constant 0 : i32
    %c0_i32_1 = arith.constant 0 : i32
    return %arg1, %c0_i32, %c0_i32_0 : i32, i32, i32
  }
  func.func @transform_8(%arg0: i32, %arg1: i32) -> (i32, i32, i32) {
    %c0_i32 = arith.constant 0 : i32
    %c0_i32_0 = arith.constant 0 : i32
    %c0_i32_1 = arith.constant 0 : i32
    return %arg1, %c0_i32, %c0_i32_0 : i32, i32, i32
  }
  func.func @transform_9(%arg0: i32, %arg1: i32) -> (i32, i32, i32) {
    %c0_i32 = arith.constant 0 : i32
    %c0_i32_0 = arith.constant 0 : i32
    %c0_i32_1 = arith.constant 0 : i32
    return %arg1, %c0_i32, %c0_i32_0 : i32, i32, i32
  }
  func.func @transform_10(%arg0: i32, %arg1: i32) -> (i32, i32, i32) {
    %c0_i32 = arith.constant 0 : i32
    %c0_i32_0 = arith.constant 0 : i32
    %c0_i32_1 = arith.constant 0 : i32
    return %arg1, %c0_i32, %c0_i32_0 : i32, i32, i32
  }
  func.func @transform_11(%arg0: i32, %arg1: i32) -> (i32, i32, i32) {
    %c0_i32 = arith.constant 0 : i32
    %c0_i32_0 = arith.constant 0 : i32
    %c0_i32_1 = arith.constant 0 : i32
    return %arg1, %c0_i32, %c0_i32_0 : i32, i32, i32
  }
  func.func @transform_12(%arg0: i32, %arg1: i32) -> (i32, i32, i32) {
    %c0_i32 = arith.constant 0 : i32
    %c0_i32_0 = arith.constant 0 : i32
    %c0_i32_1 = arith.constant 0 : i32
    return %arg1, %c0_i32, %c0_i32_0 : i32, i32, i32
  }
  func.func @transform_13(%arg0: i32, %arg1: i32) -> (i32, i32, i32) {
    %c0_i32 = arith.constant 0 : i32
    %c0_i32_0 = arith.constant 0 : i32
    %c0_i32_1 = arith.constant 0 : i32
    return %arg1, %c0_i32, %c0_i32_0 : i32, i32, i32
  }
  func.func @transform_14(%arg0: i32, %arg1: i32) -> (i32, i32, i32) {
    %c0_i32 = arith.constant 0 : i32
    %c0_i32_0 = arith.constant 0 : i32
    %c0_i32_1 = arith.constant 0 : i32
    return %arg1, %c0_i32, %c0_i32_0 : i32, i32, i32
  }
  func.func @transform_15(%arg0: i32, %arg1: i32) -> (i32, i32, i32) {
    %c0_i32 = arith.constant 0 : i32
    %c0_i32_0 = arith.constant 0 : i32
    %c0_i32_1 = arith.constant 0 : i32
    return %arg1, %c0_i32, %c0_i32_0 : i32, i32, i32
  }
  func.func @transform_16(%arg0: i32, %arg1: i32) -> (i32, i32, i32) {
    %c0_i32 = arith.constant 0 : i32
    %c0_i32_0 = arith.constant 0 : i32
    %c0_i32_1 = arith.constant 0 : i32
    return %arg0, %c0_i32, %c0_i32_0 : i32, i32, i32
  }
}

</mosaic_0001>

<bundles_post_ra>
// kernel: tpu_custom_call.1
= control target key start
LH: loop header
LB: loop body
LE: loop exit
PB: predicated region body
PF: predicated region fallthrough
CT: control target
= control target key end

     0   :  { %s4290_s0 = inlined_call_operand.vmem [shape: f32[2,8,32], index: 0, kind: input, shape index: {}]   ;;  %s4291_s1 = inlined_call_operand.vmem [shape: f32[2,16,32], index: 1, kind: input, shape index: {}]   ;;  %s4292_s2 = inlined_call_operand.vmem [shape: f32[2,1,32], index: 2, kind: input, shape index: {}]   ;;  %s4293_s3 = inlined_call_operand.vmem [shape: f32[2,1,32], index: 3, kind: input, shape index: {}]   ;;  %s4294_s4 = inlined_call_operand.vmem [shape: f32[2,1,32], index: 4, kind: input, shape index: {}]   ;;  %s4295_s5 = inlined_call_operand.vmem [shape: f32[2,1,32], index: 5, kind: input, shape index: {}]   ;;  %s4296_s6 = inlined_call_operand.vmem [shape: bf16[2,32,64], index: 6, kind: input, shape index: {}]   ;;  %s4297_s7 = inlined_call_operand.vmem [shape: bf16[2,32,64], index: 7, kind: input, shape index: {}]   ;;  %s4298_s8 = inlined_call_operand.vmem [shape: bf16[2,32,64], index: 8, kind: input, shape index: {}]   ;;  %s4299_s9 = inlined_call_operand.vmem [shape: bf16[2,64,32], index: 9, kind: input, shape index: {}]   ;;  %s4300_s10 = inlined_call_operand.vmem [shape: f32[2,1,32], index: 10, kind: input, shape index: {}]   ;;  %s4301_s11 = inlined_call_operand.vmem [shape: f32[2,1,32], index: 11, kind: input, shape index: {}]   ;;  %s4302_s12 = inlined_call_operand.vmem [shape: f32[2,1,32], index: 12, kind: input, shape index: {}]   ;;  %s4303_s13 = inlined_call_operand.vmem [shape: bf16[2,32,128], index: 13, kind: input, shape index: {}]   ;;  %s4304_s14 = inlined_call_operand.vmem [shape: f32[2,1,128], index: 14, kind: input, shape index: {}]   ;;  %s4305_s15 = inlined_call_operand.vmem [shape: bf16[2,128,32], index: 15, kind: input, shape index: {}]   ;;  %s4306_s16 = inlined_call_operand.hbm [shape: f32[2,16,32], index: 16, kind: output, shape index: {}]  }
   0x1   :  { %4312 = sst [smem:[#allocation9_spill]] %s4290_s0 }
   0x2   :  { %4313 = sst [smem:[#allocation10_spill]] %s4291_s1 }
   0x3   :  { %4314 = sst [smem:[#allocation11_spill]] %s4292_s2 }
   0x4   :  { %4315 = sst [smem:[#allocation12_spill]] %s4295_s5 }
   0x5   :  { %4316 = sst [smem:[#allocation13_spill]] %s4296_s6 }
   0x6   :  { %4317 = sst [smem:[#allocation14_spill]] %s4297_s7 }
   0x7   :  { %4318 = sst [smem:[#allocation15_spill]] %s4298_s8 }
   0x8   :  { %4319 = sst [smem:[#allocation16_spill]] %s4299_s9 }
   0x9   :  { %4320 = sst [smem:[#allocation17_spill]] %s4306_s16 }
   0xa   :  { %21 = vsyncpa [#allocation4], 0  ;;  %s3717_s21 = smov 0   ;;  %s3719_s22 = smov 0  }
   0xb   :  { %s3721_s23 = smov 0  }
   0xc LB: > { %4321 = sst [smem:[#allocation6_spill]] %s3615_s22  ;;  %s36_s25 = sadd.s32 1, %s3615_s22  ;;  %s3619_s23 = sphi %s3721_s23, %s27_s23   ;;  %s3615_s22 = sphi %s3719_s22, %s4347_s22   ;;  %s3611_s21 = sphi %s3717_s21, %s4346_s21  }
   0xd   : > { %4322 = sst [smem:[#allocation7_spill]] %s3619_s23  ;;  %p37_p0 = scmp.ge.s32.totalorder %s36_s25, 2 }
   0xe   : > { %p2997_p1 = scmp.ge.s32.totalorder %s3619_s23, 1  ;;  %p612_p2 = scmp.lt.s32.totalorder %s3619_s23, 3 }
   0xf   : > { %s4349_s25 = smov (%p37_p0, %s36_s25), 0 }
  0x10   : > { %4323 = sst [smem:[#allocation8_spill]] %s4349_s25  ;;  %p613_p3 = pnand %p2997_p1, %p612_p2 }
  0x11   : > { %p730_p4 = scmp.lt.s32.totalorder (!%p613_p3), %s3611_s21, 1  ;;  %s4326_s6 = sld [smem:[#allocation13_spill]] (!%p613_p3) }
  0x12   : > { %616 = sbr.rel (%p613_p3) target bundleno = 4852 (0x12f4), region = 84  ;;  %s4327_s7 = sld [smem:[#allocation14_spill]] (!%p613_p3) }
  0x13   : > { %s4328_s8 = sld [smem:[#allocation15_spill]] (!%p613_p3)  ;;  %s4329_s9 = sld [smem:[#allocation16_spill]] (!%p613_p3) }
  0x14   : > { %p3010_p5 = scmp.ne.s32.totalorder (!%p613_p3), %s3611_s21, 0 }
  0x19   : > { %s3740_s26 = scalar_select %p730_p4, %s3611_s21, 1 }
  0x1a   : > { %789 = sbr.rel (%p3010_p5) target bundleno = 36 (0x24), region = 88  ;;  %s4330_s23 = sld [smem:[#allocation10_spill]] (!%p3010_p5)  ;;  %vm794_vm0 = vcmask (!%p3010_p5), 261120  }
  0x1b   : > { %s3072_s25 = sshll.u32 %s3740_s26, 4  ;;  %s3075_s22 = sshll.u32 %s3740_s26, 5 }
  0x1c   : > { %s3763_s1 = scalar_lea.vmem %s4326_s6, %s3072_s25  ;;  %s3768_s30 = scalar_lea.vmem %s4327_s7, %s3072_s25 }
  0x1d   : > { %s3773_s18 = scalar_lea.vmem %s4328_s8, %s3072_s25  ;;  %s3778_s28 = scalar_lea.vmem %s4329_s9, %s3075_s22 }
  0x1e   : > { %s767_s2 = scalar_lea.vmem %s4301_s11, %s3740_s26  ;;  %s770_s5 = scalar_lea.vmem %s4302_s12, %s3740_s26 }
  0x1f   : > { %s3795_s8 = scalar_lea.vmem %s4303_s13, %s3072_s25  ;;  %s3077_s9 = sshll.u32 %s3740_s26, 6 }
  0x20   : > { %s3805_s16 = scalar_lea.vmem %s4305_s15, %s3077_s9  ;;  %s4331_s29 = smov (!%p3010_p5), %s4330_s23  ;;  %v790_v0 = vld [vmem:[%s4330_s23] sm:$0xff] (!%p3010_p5) }
  0x21   : > { %v791_v1 = vld [vmem:[%s4331_s29 + $0x8] sm:$0xff]  ;;  %v792_v2 = vld [vmem:[%s4331_s29 + $0x10] sm:$0xff]  ;;  %795 = vst.msk [vmem:[#allocation2] sm:$0xff] %vm794_vm0, %v790_v0  ;;  %v793_v3 = vld [vmem:[%s4331_s29 + $0x18] sm:$0xff] }
  0x22   : > { %796 = vst.msk [vmem:[#allocation2 + $0x8] sm:$0xff] %vm794_vm0, %v791_v1  ;;  %797 = vst.msk [vmem:[#allocation2 + $0x10] sm:$0xff] %vm794_vm0, %v792_v2 }
  0x23   : > { %798 = vst.msk [vmem:[#allocation2 + $0x18] sm:$0xff] %vm794_vm0, %v793_v3 }
  0x24 PF: > { %vm825_vm1 = vcmask 261120   ;;  %v3439_v32 = vld [vmem:[%s3768_s30] sm:$0xff]   ;;  %v3621_v33 = vmov 0.0   ;;  %v3440_v34 = vld [vmem:[%s3768_s30 + $0x8] sm:$0xff]   ;;  %vm3622_vm2 = vmmov 0   ;;  %s4332_s24 = sld [smem:[#allocation9_spill]]  ;;  %s4335_s0 = scalar_lea.vmem %s4293_s3, %s3740_s26 }
  0x25   : > { %3168 = vmatprep.subr.bf16.mxu1 %v3621_v33  ;;  %v3441_v35 = vld [vmem:[%s3763_s1] sm:$0xff]   ;;  %3172 = vmatprep.mubr.msk.bf16.mxu1 %vm3622_vm2, %v3621_v33  ;;  %v3442_v36 = vld [vmem:[%s3763_s1 + $0x8] sm:$0xff]   ;;  %s4333_s7 = sld [smem:[#allocation11_spill]]  ;;  %s4336_s22 = scalar_lea.vmem %s4294_s4, %s3740_s26  ;;  %vm1140_vm3 = vcmask 130048   ;;  %vm1291_vm4 = vcmask 1043456   ;;  %vm1241_vm5 = vcmask 195584  }
  0x26   : > { %3169 = vmatpush3.bf16.msra.mxu1 %v3439_v32  ;;  %3160 = vmatprep.subr.bf16.mxu0 %v3441_v35  ;;  %v3012_v53 = vld [vmem:[%s4335_s0] ss:$0 sm:$0xff]  ;;  %s4337_s27 = sld [smem:[#allocation12_spill]]  ;;  %s3626_s25 = smov 16   ;;  %vm2235_vm6 = vcmask 392192   ;;  %vm2274_vm7 = vcmask 523264  }
  0x27   : > { %3170 = vmatprep.subr.bf16.mxu1 %v3621_v33  ;;  %3161 = vmatpush3.bf16.msra.mxu0 %v3441_v35  ;;  %v3013_v54 = vld [vmem:[%s4336_s22] ss:$0 sm:$0xff]  ;;  %s3627_s17 = smov 32   ;;  %s3628_s0 = smov 48  }
  0x28   : > { %3162 = vmatprep.subr.bf16.mxu0 %v3442_v36  ;;  %s4339_s9 = scalar_lea.vmem %s4300_s10, %s3740_s26  ;;  %s4340_s30 = scalar_lea.vmem %s4304_s14, %s3740_s26 }
  0x29   : > { %v801_v5 = vld [vmem:[#allocation2 + $0x10] sm:$0xff]  ;;  %v800_v6 = vld [vmem:[#allocation2 + $0x8] sm:$0xff]  ;;  %p3067_p6 = scmp.ne.s32.totalorder %s3611_s21, 1 }
  0x2a   : > { %v832_v8 = vsel %vm825_vm1, %v801_v5, 0.0  ;;  %v802_v9 = vld [vmem:[#allocation2 + $0x18] sm:$0xff]  ;;  %v829_v10 = vsel %vm825_vm1, %v800_v6, 0.0  ;;  %3171 = vmatpush3.bf16.msra.mxu1 %v3440_v34  ;;  %v803_v49 = vld [vmem:[%s4332_s24] sm:$0xff]  ;;  %v804_v60 = vld [vmem:[%s4332_s24 + $0x8] sm:$0xff] }
  0x2b   : > { %v799_v4 = vld [vmem:[#allocation2] sm:$0xff]  ;;  %833 = vadd.xlane.f32.xlu1 %v832_v8  ;;  %v835_v11 = vsel %vm825_vm1, %v802_v9, 0.0  ;;  %3200 = vmatprep.subr.bf16.mxu1 %v3621_v33  ;;  %s4334_s23 = scalar_lea.vmem %s4333_s7, %s3740_s26 }
  0x2c   : > { %v826_v7 = vsel %vm825_vm1, %v799_v4, 0.0  ;;  %3163 = vmatpush3.bf16.msra.mxu0 %v3442_v36  ;;  %v3011_v50 = vld [vmem:[%s4334_s23] ss:$0 sm:$0xff]  ;;  %s4338_s20 = scalar_lea.vmem %s4337_s27, %s3740_s26  ;;  %s3624_s27 = smov 96  }
  0x2d   : > { %827 = vadd.xlane.f32.xlu0 %v826_v7  ;;  %3184 = vmatprep.subr.bf16.mxu0 %v3621_v33  ;;  %v812_v51 = vmul.f32 %v3011_v50, %v803_v49  ;;  %v3014_v56 = vld [vmem:[%s4338_s20] ss:$0 sm:$0xff]  ;;  %v813_v2 = vmul.f32 %v3011_v50, %v804_v60  ;;  %s3625_s23 = smov 80  }
  0x2f   : > { %836 = vadd.xlane.f32.xlu1 %v835_v11  ;;  %v821_v57 = vadd.f32 %v3012_v53, %v812_v51  ;;  %v822_v8 = vadd.f32 %v3012_v53, %v813_v2 }
  0x31   : > { %830 = vadd.xlane.f32.xlu0 %v829_v10 }
  0xb8   : > { %v834_v13 = vpop.xlane.xlu1 %833 }
  0xb9   : > { %v841_v15 = vmul.f32 0.03125, %v834_v13  ;;  %v3443_v13 = vld [vmem:[%s3773_s18] sm:$0xff]  }
  0xba   : > { %v828_v12 = vpop.xlane.xlu0 %827 }
  0xbb   : > { %v839_v14 = vmul.f32 0.03125, %v828_v12  ;;  %v3824_v17 = vsub.f32 %v801_v5, %v841_v15 }
  0xbc   : > { %v837_v19 = vpop.xlane.xlu1 %836 }
  0xbd   : > { %v843_v16 = vsub.f32 %v799_v4, %v839_v14  ;;  %v842_v21 = vmul.f32 0.03125, %v837_v19  ;;  %v849_v23 = vmul.f32 %v3824_v17, %v3824_v17 }
  0xbe   : > { %v831_v18 = vpop.xlane.xlu0 %830 }
  0xbf   : > { %v840_v20 = vmul.f32 0.03125, %v831_v18  ;;  %v847_v22 = vmul.f32 %v843_v16, %v843_v16  ;;  %v3828_v25 = vsub.f32 %v802_v9, %v842_v21  ;;  %v857_v27 = vsel %vm825_vm1, %v849_v23, 0.0 }
  0xc1   : > { %v844_v24 = vsub.f32 %v800_v6, %v840_v20  ;;  %v851_v26 = vsel %vm825_vm1, %v847_v22, 0.0  ;;  %v850_v29 = vmul.f32 %v3828_v25, %v3828_v25 }
  0xc2   : > { %852 = vadd.xlane.f32.xlu0 %v851_v26 }
  0xc3   : > { %v848_v28 = vmul.f32 %v844_v24, %v844_v24  ;;  %v860_v31 = vsel %vm825_vm1, %v850_v29, 0.0 }
  0xc5   : > { %v854_v30 = vsel %vm825_vm1, %v848_v28, 0.0 }
  0xc6   : > { %858 = vadd.xlane.f32.xlu0 %v857_v27  ;;  %855 = vadd.xlane.f32.xlu1 %v854_v30 }
  0xca   : > { %861 = vadd.xlane.f32.xlu1 %v860_v31 }
 0x14f   : > { %v853_v37 = vpop.xlane.xlu0 %852 }
 0x150   : > { %v863_v38 = vmul.f32 0.03125, %v853_v37 }
 0x152   : > { %v867_v39 = vadd.f32 1e-05, %v863_v38 }
 0x153   : > { %v856_v40 = vpop.xlane.xlu1 %855  ;;  %v859_v41 = vpop.xlane.xlu0 %858 }
 0x154   : > { %3459 = vrsqrt.f32 %v867_v39  ;;  %v864_v42 = vmul.f32 0.03125, %v856_v40  ;;  %v865_v43 = vmul.f32 0.03125, %v859_v41 }
 0x156   : > { %v868_v44 = vadd.f32 1e-05, %v864_v42  ;;  %v869_v45 = vadd.f32 1e-05, %v865_v43 }
 0x157   : > { %v862_v46 = vpop.xlane.xlu1 %861 }
 0x158   : > { %3461 = vrsqrt.f32 %v868_v44  ;;  %v866_v47 = vmul.f32 0.03125, %v862_v46 }
 0x159   : > { %3463 = vrsqrt.f32 %v869_v45 }
 0x15a   : > { %v870_v48 = vadd.f32 1e-05, %v866_v47 }
 0x15c   : > { %3465 = vrsqrt.f32 %v870_v48 }
 0x15e   : > { %v3460_v52 = vpop.eup %3459 }
 0x15f   : > { %v875_v55 = vmul.f32 %v3460_v52, %v843_v16  ;;  %v3444_v16 = vld [vmem:[%s3773_s18 + $0x8] sm:$0xff]   ;;  %s3623_s18 = smov 112  }
 0x161   : > { %v885_v58 = vmul.f32 %v3013_v54, %v875_v55 }
 0x162   : > { %v3462_v59 = vpop.eup %3461 }
 0x163   : > { %v3464_v61 = vpop.eup %3463  ;;  %v895_v62 = vadd.f32 %v3014_v56, %v885_v58  ;;  %v876_v63 = vmul.f32 %v3462_v59, %v844_v24 }
 0x164   : > { %v877_v0 = vmul.f32 %v3464_v61, %v3824_v17 }
 0x165   : > { %v901_v1 = vpack.c.bf16 %v895_v62, %v821_v57  ;;  %v886_v3 = vmul.f32 %v3013_v54, %v876_v63 }
 0x166   : > { %v3466_v4 = vpop.eup %3465  ;;  %v887_v7 = vmul.f32 %v3013_v54, %v877_v0 }
 0x167   : > { %v878_v5 = vmul.f32 %v3466_v4, %v3828_v25  ;;  %3173 = vmatmul.mubr.msk.bf16.vlgmr.msra.gmra.mrb[0].mxu1 %vm825_vm1, %v901_v1  ;;  %v896_v6 = vadd.f32 %v3014_v56, %v886_v3 }
 0x168   : > { %3176 = vmatprep.mubr.msk.bf16.mxu1 %vm3622_vm2, %v3621_v33  ;;  %v897_v11 = vadd.f32 %v3014_v56, %v887_v7 }
 0x169   : > { %v899_v9 = vpack.c.bf16 %v896_v6, %v895_v62  ;;  %v888_v10 = vmul.f32 %v3013_v54, %v878_v5  ;;  %v902_v14 = vpack.c.bf16 %v822_v8, %v896_v6 }
 0x16b   : > { %3164 = vmatprep.mubr.msk.bf16.mxu0 %vm825_vm1, %v899_v9  ;;  %v898_v12 = vadd.f32 %v3014_v56, %v888_v10 }
 0x16d   : > { %v900_v15 = vpack.c.bf16 %v898_v12, %v897_v11 }
 0x16f   : > { %3165 = vmatmul.mubr.msk.bf16.vlgmr.msra.gmra.mrb[0].mxu0 %vm825_vm1, %v900_v15  ;;  %3177 = vmatmul.mubr.msk.bf16.gmra.mrb[4].mxu1 %vm825_vm1, %v902_v14 }
 0x170   : > { %3185 = vmatpush3.bf16.msra.mxu0 %v3443_v13  ;;  %3180 = vmatprep.mubr.msk.bf16.mxu1 %vm3622_vm2, %v3621_v33 }
 0x171   : > { %3186 = vmatprep.subr.bf16.mxu0 %v3621_v33  ;;  %3188 = vmatprep.mubr.msk.bf16.mxu0 %vm3622_vm2, %v3621_v33 }
 0x174   : > { %3187 = vmatpush3.bf16.msra.mxu0 %v3444_v16 }
 0x175   : > { %3208 = vmatprep.subr.bf16.mxu0 %v3621_v33 }
 0x177   : > { %3181 = vmatmul.mubr.msk.bf16.gmra.mrb[8].mxu1 %vm825_vm1, %v900_v15  ;;  %3189 = vmatmul.mubr.msk.bf16.vlgmr.msra.gmra.mrb[4].mxu0 %vm825_vm1, %v901_v1 }
 0x178   : > { %3192 = vmatprep.mubr.msk.bf16.mxu0 %vm3622_vm2, %v3621_v33  ;;  %3204 = vmatprep.mubr.msk.bf16.mxu1 %vm3622_vm2, %v3621_v33 }
 0x17f   : > { %3193 = vmatmul.mubr.msk.bf16.gmra.mrb[8].mxu0 %vm825_vm1, %v902_v14 }
 0x180   : > { %3196 = vmatprep.mubr.msk.bf16.mxu0 %vm3622_vm2, %v3621_v33 }
 0x187   : > { %3197 = vmatmul.mubr.msk.bf16.gmra.mrb[12].mxu0 %vm825_vm1, %v900_v15 }
 0x188   : > { %3212 = vmatprep.mubr.msk.bf16.mxu0 %vm3622_vm2, %v3621_v33 }
 0x23a   : > { %v1036_v17 = vpop.f32.mrb[0].mxu1 }
 0x23b   : > { %v3174_v18 = vpop.f32.mrb[1].mxu1 }
 0x23c   : > { %v1039_v19 = vpop.f32.mrb[2].mxu1 }
 0x23d   : > { %v3900_v20 = vpack.c.bf16 %v1039_v19, %v1036_v17  ;;  %v3175_v21 = vpop.f32.mrb[3].mxu1 }
 0x23f   : > { %v1145_v22 = vsel %vm1140_vm3, %v3900_v20, 0 }
 0x240   : > { %3201 = vmatpush3.bf16.xpose.msra.mxu1 %v1145_v22 }
 0x241   : > { %3202 = vmatprep.subr.bf16.mxu1 %v3621_v33 }
 0x242   : > { %v3166_v23 = vpop.f32.mrb[0].mxu0  ;;  %v1044_v24 = vpop.f32.mrb[4].mxu1 }
 0x243   : > { %v3905_v25 = vpack.c.bf16 %v1044_v24, %v1044_v24  ;;  %v959_v26 = vpop.f32.mrb[1].mxu0  ;;  %v3178_v27 = vpop.f32.mrb[5].mxu1  ;;  %v976_v30 = vmul.f32 0.25, %v3166_v23 }
 0x244   : > { %v3167_v28 = vpop.f32.mrb[2].mxu0  ;;  %v1047_v29 = vpop.f32.mrb[6].mxu1  ;;  %v974_v35 = vmul.f32 0.25, %v959_v26 }
 0x245   : > { %v977_v31 = vmul.f32 0.25, %v3167_v28  ;;  %v962_v32 = vpop.f32.mrb[3].mxu0  ;;  %v3179_v34 = vpop.f32.mrb[7].mxu1  ;;  %v1148_v38 = vsel %vm1140_vm3, %v3905_v25, 0 }
 0x246   : > { %v975_v36 = vmul.f32 0.25, %v962_v32 }
 0x247   : > { %v3907_v37 = vpack.c.bf16 %v977_v31, %v976_v30 }
 0x248   : > { %v3911_v39 = vpack.c.bf16 %v975_v36, %v974_v35  ;;  %3203 = vmatpush3.bf16.xpose.msra.mxu1 %v1148_v38 }
 0x249   : > { %3216 = vmatprep.subr.bf16.mxu1 %v3621_v33 }
 0x24a   : > { %v1052_v40 = vpop.f32.mrb[8].mxu1  ;;  %v1113_v41 = vpop.f32.mrb[4].mxu0 }
 0x24b   : > { %v3914_v42 = vpack.c.bf16 %v1052_v40, %v1047_v29  ;;  %v3182_v43 = vpop.f32.mrb[9].mxu1  ;;  %v3190_v44 = vpop.f32.mrb[5].mxu0 }
 0x24c   : > { %v1055_v45 = vpop.f32.mrb[10].mxu1  ;;  %v1116_v46 = vpop.f32.mrb[6].mxu0 }
 0x24d   : > { %v3916_v47 = vpack.c.bf16 %v1116_v46, %v1113_v41  ;;  %v3183_v48 = vpop.f32.mrb[11].mxu1  ;;  %v3191_v49 = vpop.f32.mrb[7].mxu0  ;;  %v1195_v50 = vsel %vm1140_vm3, %v3914_v42, 0  ;;  %v3926_v51 = vpack.c.bf16 %v1055_v45, %v1055_v45 }
 0x24e   : > { %3209 = vmatpush3.bf16.xpose.msra.mxu0 %v1195_v50 }
 0x24f   : > { %3205 = vmatmul.mubr.msk.bf16.vlgmr.msra.gmra.mrb[12].mxu1 %vm1140_vm3, %v3911_v39  ;;  %3210 = vmatprep.subr.bf16.mxu0 %v3621_v33  ;;  %v1198_v57 = vsel %vm1140_vm3, %v3926_v51, 0 }
 0x250   : > { %3217 = vmatpush3.bf16.msra.mxu1 %v3916_v47  ;;  %3220 = vmatprep.mubr.msk.bf16.mxu1 %vm3622_vm2, %v3621_v33 }
 0x251   : > { %3218 = vmatprep.subr.bf16.mxu1 %v3621_v33 }
 0x252   : > { %v1121_v52 = vpop.f32.mrb[8].mxu0 }
 0x253   : > { %v3929_v53 = vpack.c.bf16 %v1121_v52, %v1121_v52  ;;  %v3194_v54 = vpop.f32.mrb[9].mxu0 }
 0x254   : > { %v1124_v55 = vpop.f32.mrb[10].mxu0 }
 0x255   : > { %v3195_v56 = vpop.f32.mrb[11].mxu0  ;;  %v1293_v58 = vsel %vm1291_vm4, %v3929_v53, 0 }
 0x256   : > { %3211 = vmatpush3.bf16.xpose.msra.mxu0 %v1198_v57  ;;  %3219 = vmatpush3.bf16.msra.mxu1 %v1293_v58 }
 0x257   : > { %3224 = vmatprep.subr.bf16.mxu0 %v3621_v33  ;;  %3232 = vmatprep.subr.bf16.mxu1 %v3621_v33 }
 0x25a   : > { %v1129_v59 = vpop.f32.mrb[12].mxu0 }
 0x25b   : > { %v3937_v60 = vpack.c.bf16 %v1129_v59, %v1124_v55  ;;  %v3198_v61 = vpop.f32.mrb[13].mxu0 }
 0x25c   : > { %v1132_v62 = vpop.f32.mrb[14].mxu0 }
 0x25d   : > { %v3939_v63 = vpack.c.bf16 %v1132_v62, %v1132_v62  ;;  %v3199_v0 = vpop.f32.mrb[15].mxu0  ;;  %3213 = vmatmul.mubr.msk.bf16.vlgmr.msra.gmra.mrb[16].mxu0 %vm1140_vm3, %v3907_v37 }
 0x25e   : > { %3225 = vmatpush3.bf16.msra.mxu0 %v3937_v60  ;;  %3228 = vmatprep.mubr.msk.bf16.mxu0 %vm3622_vm2, %v3621_v33 }
 0x25f   : > { %3226 = vmatprep.subr.bf16.mxu0 %v3621_v33  ;;  %v1340_v1 = vsel %vm1291_vm4, %v3939_v63, 0 }
 0x262   : > { %3227 = vmatpush3.bf16.msra.mxu0 %v1340_v1 }
 0x263   : > { %3256 = vmatprep.subr.bf16.mxu0 %v3621_v33 }
 0x322   : > { %v1184_v2 = vpop.f32.mrb[12].mxu1 }
 0x323   : > { %v3206_v3 = vpop.f32.mrb[13].mxu1  ;;  %v1242_v4 = vsel %vm1241_vm5, %v1184_v2, -inf }
 0x324   : > { %1243 = vmax.xlane.f32.xlu0 %v1242_v4  ;;  %v1187_v5 = vpop.f32.mrb[14].mxu1 }
 0x325   : > { %v3207_v6 = vpop.f32.mrb[15].mxu1  ;;  %v1245_v7 = vsel %vm1241_vm5, %v1187_v5, -inf }
 0x326   : > { %1246 = vmax.xlane.f32.xlu1 %v1245_v7 }
 0x330   : > { %v3952_v8 = vpop.f32.mrb[16].mxu0 }
 0x331   : > { %v3214_v9 = vpop.f32.mrb[17].mxu0  ;;  %v1248_v23 = vsel %vm1241_vm5, %v3952_v8, -inf }
 0x332   : > { %v1237_v10 = vpop.f32.mrb[18].mxu0 }
 0x333   : > { %v3215_v11 = vpop.f32.mrb[19].mxu0  ;;  %v1251_v24 = vsel %vm1241_vm5, %v1237_v10, -inf }
 0x3b1   : > { %v1244_v12 = vpop.xlane.xlu0 %1243 }
 0x3b2   : > { %v1254_v13 = vsub.f32 %v1184_v2, %v1244_v12 }
 0x3b3   : > { %v1247_v14 = vpop.xlane.xlu1 %1246 }
 0x3b4   : > { %v1258_v15 = vmul.f32 1.442695, %v1254_v13  ;;  %v1255_v16 = vsub.f32 %v1187_v5, %v1247_v14 }
 0x3b6   : > { %3467 = vpow2.f32 %v1258_v15  ;;  %v1260_v17 = vmul.f32 1.442695, %v1255_v16 }
 0x3b8   : > { %3469 = vpow2.f32 %v1260_v17 }
 0x3c0   : > { %v3468_v18 = vpop.eup %3467 }
 0x3c1   : > { %v1266_v19 = vsel %vm1241_vm5, %v3468_v18, 0.0 }
 0x3c2   : > { %v3470_v21 = vpop.eup %3469  ;;  %1267 = vadd.xlane.f32.xlu0 %v1266_v19 }
 0x3c3   : > { %v1269_v22 = vsel %vm1241_vm5, %v3470_v21, 0.0 }
 0x3c4   : > { %1270 = vadd.xlane.f32.xlu1 %v1269_v22 }
 0x3d5   : > { %1390 = vrot.lane.b32.xlu1 %v3905_v25, %s3623_s18 }
 0x3d8   : > { %1388 = vrot.lane.b32.xlu0 %v3900_v20, %s3623_s18 }
 0x3d9   : > { %1447 = vrot.lane.b32.xlu1 %v3914_v42, %s3623_s18 }
 0x3dc   : > { %1449 = vrot.lane.b32.xlu0 %v3926_v51, %s3623_s18 }
 0x3dd   : > { %1384 = vrot.lane.b32.xlu1 %v3911_v39, %s3623_s18 }
 0x3e1   : > { %1443 = vrot.lane.b32.xlu1 %v3907_v37, %s3623_s18 }
 0x3fb   : > { %1249 = vmax.xlane.f32.xlu0 %v1248_v23 }
 0x405   : > { %1252 = vmax.xlane.f32.xlu1 %v1251_v24 }
 0x44f   : > { %v1268_v26 = vpop.xlane.xlu0 %1267 }
 0x450   : > { %3471 = vrcp.f32 %v1268_v26 }
 0x451   : > { %v1271_v27 = vpop.xlane.xlu1 %1270 }
 0x452   : > { %3473 = vrcp.f32 %v1271_v27 }
 0x453   : > { %v1389_v32 = vpop.permute.xlu0 %1388 }
 0x454   : > { %v1396_v35 = vsel %vm1140_vm3, %v1389_v32, 0 }
 0x455   : > { %v1391_v36 = vpop.permute.xlu1 %1390 }
 0x456   : > { %v1399_v38 = vsel %vm1140_vm3, %v1391_v36, 0 }
 0x457   : > { %v1450_v44 = vpop.permute.xlu0 %1449 }
 0x458   : > { %v1458_v45 = vsel %vm1140_vm3, %v1450_v44, 0 }
 0x459   : > { %v1448_v40 = vpop.permute.xlu1 %1447 }
 0x45a   : > { %v3472_v28 = vpop.eup %3471  ;;  %v1455_v43 = vsel %vm1140_vm3, %v1448_v40, 0 }
 0x45b   : > { %v1282_v30 = vmul.f32 %v3472_v28, %v3468_v18 }
 0x45c   : > { %v3474_v29 = vpop.eup %3473 }
 0x45d   : > { %v1283_v31 = vmul.f32 %v3474_v29, %v3470_v21  ;;  %v1385_v41 = vpop.permute.xlu1 %1384 }
 0x45f   : > { %v1286_v34 = vpack.c.bf16 %v1283_v31, %v1282_v30 }
 0x461   : > { %3221 = vmatmul.mubr.msk.bf16.vlgmr.msra.gmra.mrb[16].mxu1 %vm1241_vm5, %v1286_v34  ;;  %v1444_v46 = vpop.permute.xlu1 %1443 }
 0x462   : > { %3233 = vmatpush3.bf16.xpose.msra.mxu1 %v1396_v35  ;;  %3236 = vmatprep.mubr.msk.bf16.mxu1 %vm3622_vm2, %v3621_v33 }
 0x463   : > { %3234 = vmatprep.subr.bf16.mxu1 %v3621_v33 }
 0x46a   : > { %3235 = vmatpush3.bf16.xpose.msra.mxu1 %v1399_v38 }
 0x46b   : > { %3240 = vmatprep.subr.bf16.mxu1 %v3621_v33 }
 0x471   : > { %3237 = vmatmul.mubr.msk.bf16.vlgmr.msra.gmra.mrb[20].mxu1 %vm1140_vm3, %v1385_v41 }
 0x472   : > { %3241 = vmatpush3.bf16.xpose.msra.mxu1 %v1455_v43  ;;  %3244 = vmatprep.mubr.msk.bf16.mxu1 %vm3622_vm2, %v3621_v33 }
 0x473   : > { %3242 = vmatprep.subr.bf16.mxu1 %v3621_v33 }
 0x47a   : > { %3243 = vmatpush3.bf16.xpose.msra.mxu1 %v1458_v45 }
 0x47b   : > { %3248 = vmatprep.subr.bf16.mxu1 %v3621_v33 }
 0x481   : > { %3245 = vmatmul.mubr.msk.bf16.vlgmr.msra.gmra.mrb[24].mxu1 %vm1140_vm3, %v1444_v46 }
 0x482   : > { %3252 = vmatprep.mubr.msk.bf16.mxu1 %vm3622_vm2, %v3621_v33 }
 0x488   : > { %v1250_v59 = vpop.xlane.xlu0 %1249 }
 0x489   : > { %v1256_v61 = vsub.f32 %v3952_v8, %v1250_v59 }
 0x48b   : > { %v1262_v4 = vmul.f32 1.442695, %v1256_v61 }
 0x492   : > { %v1253_v48 = vpop.xlane.xlu1 %1252 }
 0x493   : > { %v1257_v49 = vsub.f32 %v1237_v10, %v1253_v48 }
 0x495   : > { %v1264_v50 = vmul.f32 1.442695, %v1257_v49 }
 0x497   : > { %3475 = vpow2.f32 %v1264_v50 }
 0x498   : > { %3477 = vpow2.f32 %v1262_v4 }
 0x4a1   : > { %v3988_v52 = vpop.eup %3475 }
 0x4a2   : > { %v1275_v54 = vsel %vm1241_vm5, %v3988_v52, 0.0  ;;  %v3478_v10 = vpop.eup %3477 }
 0x4a3   : > { %1276 = vadd.xlane.f32.xlu1 %v1275_v54  ;;  %v1272_v13 = vsel %vm1241_vm5, %v3478_v10, 0.0 }
 0x4b4   : > { %1603 = vrot.lane.b32.xlu1 %v3937_v60, %s3623_s18 }
 0x4b8   : > { %1551 = vrot.lane.b32.xlu1 %v3929_v53, %s3623_s18 }
 0x530   : > { %v1277_v21 = vpop.xlane.xlu1 %1276 }
 0x534   : > { %v3996_v55 = vpop.f32.mrb[16].mxu1  ;;  %v1604_v28 = vpop.permute.xlu1 %1603 }
 0x535   : > { %v3222_v56 = vpop.f32.mrb[17].mxu1 }
 0x536   : > { %v3998_v57 = vpop.f32.mrb[18].mxu1 }
 0x537   : > { %v3223_v58 = vpop.f32.mrb[19].mxu1 }
 0x538   : > { %v1552_v34 = vpop.permute.xlu1 %1551 }
 0x539   : > { %v1558_v35 = vsel %vm1291_vm4, %v1552_v34, 0 }
 0x544   : > { %v1435_v62 = vpop.f32.mrb[20].mxu1 }
 0x545   : > { %v3238_v0 = vpop.f32.mrb[21].mxu1  ;;  %v1501_v1 = vsel %vm1241_vm5, %v1435_v62, -inf }
 0x546   : > { %1502 = vmax.xlane.f32.xlu0 %v1501_v1  ;;  %v1438_v2 = vpop.f32.mrb[22].mxu1 }
 0x547   : > { %v3239_v3 = vpop.f32.mrb[23].mxu1  ;;  %v1504_v5 = vsel %vm1241_vm5, %v1438_v2, -inf }
 0x54a   : > { %1505 = vmax.xlane.f32.xlu0 %v1504_v5 }
 0x554   : > { %v1494_v6 = vpop.f32.mrb[24].mxu1 }
 0x555   : > { %v3246_v7 = vpop.f32.mrb[25].mxu1  ;;  %v1507_v9 = vsel %vm1241_vm5, %v1494_v6, -inf }
 0x556   : > { %1508 = vmax.xlane.f32.xlu0 %v1507_v9  ;;  %v1497_v11 = vpop.f32.mrb[26].mxu1 }
 0x557   : > { %v3247_v8 = vpop.f32.mrb[27].mxu1  ;;  %v1510_v12 = vsel %vm1241_vm5, %v1497_v11, -inf }
 0x558   : > { %1511 = vmax.xlane.f32.xlu1 %v1510_v12 }
 0x55a   : > { %1273 = vadd.xlane.f32.xlu0 %v1272_v13 }
 0x569   : > { %1605 = vrot.lane.b32.xlu1 %v3939_v63, %s3623_s18 }
 0x570   : > { %1549 = vrot.lane.b32.xlu0 %v3916_v47, %s3623_s18 }
 0x5d3   : > { %v1503_v14 = vpop.xlane.xlu0 %1502 }
 0x5d4   : > { %v1513_v15 = vsub.f32 %v1435_v62, %v1503_v14 }
 0x5d6   : > { %v1517_v16 = vmul.f32 1.442695, %v1513_v15 }
 0x5d7   : > { %v1506_v17 = vpop.xlane.xlu0 %1505 }
 0x5d8   : > { %3479 = vpow2.f32 %v1517_v16  ;;  %v1514_v18 = vsub.f32 %v1438_v2, %v1506_v17 }
 0x5da   : > { %v1519_v19 = vmul.f32 1.442695, %v1514_v18 }
 0x5dc   : > { %3481 = vpow2.f32 %v1519_v19 }
 0x5dd   : > { %3483 = vrcp.f32 %v1277_v21 }
 0x5e2   : > { %v3480_v22 = vpop.eup %3479 }
 0x5e3   : > { %v1509_v23 = vpop.xlane.xlu0 %1508  ;;  %v1525_v24 = vsel %vm1241_vm5, %v3480_v22, 0.0 }
 0x5e4   : > { %v1515_v26 = vsub.f32 %v1494_v6, %v1509_v23  ;;  %1526 = vadd.xlane.f32.xlu0 %v1525_v24 }
 0x5e5   : > { %v1512_v41 = vpop.xlane.xlu1 %1511 }
 0x5e6   : > { %v3482_v27 = vpop.eup %3481  ;;  %v1521_v29 = vmul.f32 1.442695, %v1515_v26  ;;  %v1516_v50 = vsub.f32 %v1497_v11, %v1512_v41 }
 0x5e7   : > { %v1274_v30 = vpop.xlane.xlu0 %1273  ;;  %v1528_v31 = vsel %vm1241_vm5, %v3482_v27, 0.0  ;;  %v3484_v36 = vpop.eup %3483 }
 0x5e8   : > { %3485 = vpow2.f32 %v1521_v29  ;;  %1529 = vadd.xlane.f32.xlu1 %v1528_v31  ;;  %v1285_v44 = vmul.f32 %v3484_v36, %v3988_v52  ;;  %v1523_v52 = vmul.f32 1.442695, %v1516_v50 }
 0x5e9   : > { %3487 = vrcp.f32 %v1274_v30  ;;  %v1606_v48 = vpop.permute.xlu1 %1605 }
 0x5ea   : > { %v1612_v49 = vsel %vm1291_vm4, %v1606_v48, 0  ;;  %3489 = vpow2.f32 %v1523_v52 }
 0x5eb   : > { %v1550_v32 = vpop.permute.xlu0 %1549 }
 0x5ec   : > { %3249 = vmatpush3.bf16.msra.mxu1 %v1550_v32 }
 0x5ed   : > { %3250 = vmatprep.subr.bf16.mxu1 %v3621_v33 }
 0x5f0   : > { %3251 = vmatpush3.bf16.msra.mxu1 %v1558_v35 }
 0x5f1   : > { %3264 = vmatprep.subr.bf16.mxu1 %v3621_v33 }
 0x5f2   : > { %v3486_v38 = vpop.eup %3485 }
 0x5f3   : > { %v3488_v40 = vpop.eup %3487  ;;  %v1531_v43 = vsel %vm1241_vm5, %v3486_v38, 0.0 }
 0x5f4   : > { %v1284_v45 = vmul.f32 %v3488_v40, %v3478_v10  ;;  %1532 = vadd.xlane.f32.xlu0 %v1531_v43  ;;  %v3490_v54 = vpop.eup %3489 }
 0x5f5   : > { %v1534_v56 = vsel %vm1241_vm5, %v3490_v54, 0.0 }
 0x5f6   : > { %v1287_v46 = vpack.c.bf16 %v1285_v44, %v1284_v45 }
 0x5f8   : > { %3229 = vmatmul.mubr.msk.bf16.vlgmr.msra.gmra.mrb[20].mxu0 %vm1241_vm5, %v1287_v46 }
 0x5f9   : > { %3257 = vmatpush3.bf16.msra.mxu0 %v1604_v28  ;;  %1713 = vrot.lane.b32.xlu1 %v3914_v42, %s3624_s27 }
 0x5fa   : > { %3258 = vmatprep.subr.bf16.mxu0 %v3621_v33  ;;  %3260 = vmatprep.mubr.msk.bf16.mxu0 %vm3622_vm2, %v3621_v33 }
 0x5fd   : > { %3259 = vmatpush3.bf16.msra.mxu0 %v1612_v49 }
 0x5fe   : > { %3272 = vmatprep.subr.bf16.mxu0 %v3621_v33 }
 0x60a   : > { %1657 = vrot.lane.b32.xlu0 %v3900_v20, %s3624_s27 }
 0x60e   : > { %1659 = vrot.lane.b32.xlu0 %v3905_v25, %s3624_s27 }
 0x612   : > { %1655 = vrot.lane.b32.xlu0 %v3911_v39, %s3624_s27 }
 0x61d   : > { %1535 = vadd.xlane.f32.xlu1 %v1534_v56 }
 0x62e   : > { %1715 = vrot.lane.b32.xlu1 %v3926_v51, %s3624_s27 }
 0x632   : > { %1711 = vrot.lane.b32.xlu1 %v3907_v37, %s3624_s27 }
 0x671   : > { %v1527_v58 = vpop.xlane.xlu0 %1526 }
 0x672   : > { %3491 = vrcp.f32 %v1527_v58 }
 0x675   : > { %v1530_v59 = vpop.xlane.xlu1 %1529 }
 0x676   : > { %3493 = vrcp.f32 %v1530_v59 }
 0x679   : > { %v1714_v10 = vpop.permute.xlu1 %1713 }
 0x67a   : > { %v1721_v16 = vsel %vm1140_vm3, %v1714_v10, 0 }
 0x67c   : > { %v3492_v61 = vpop.eup %3491 }
 0x67d   : > { %v1541_v0 = vmul.f32 %v3492_v61, %v3480_v22 }
 0x680   : > { %v3494_v62 = vpop.eup %3493 }
 0x681   : > { %v1542_v1 = vmul.f32 %v3494_v62, %v3482_v27  ;;  %v1533_v2 = vpop.xlane.xlu0 %1532 }
 0x682   : > { %3495 = vrcp.f32 %v1533_v2 }
 0x683   : > { %v1545_v3 = vpack.c.bf16 %v1542_v1, %v1541_v0 }
 0x685   : > { %v1658_v4 = vpop.permute.xlu0 %1657  ;;  %3253 = vmatmul.mubr.msk.bf16.vlgmr.msra.gmra.mrb[28].mxu1 %vm1241_vm5, %v1545_v3 }
 0x686   : > { %v1665_v5 = vsel %vm1140_vm3, %v1658_v4, 0  ;;  %3268 = vmatprep.mubr.msk.bf16.mxu1 %vm3622_vm2, %v3621_v33 }
 0x687   : > { %3265 = vmatpush3.bf16.xpose.msra.mxu1 %v1665_v5 }
 0x688   : > { %3266 = vmatprep.subr.bf16.mxu1 %v3621_v33 }
 0x689   : > { %v1660_v6 = vpop.permute.xlu0 %1659 }
 0x68a   : > { %v1668_v7 = vsel %vm1140_vm3, %v1660_v6, 0 }
 0x68c   : > { %v3496_v8 = vpop.eup %3495 }
 0x68d   : > { %v1656_v9 = vpop.permute.xlu0 %1655  ;;  %v1543_v13 = vmul.f32 %v3496_v8, %v3486_v38 }
 0x68f   : > { %3267 = vmatpush3.bf16.xpose.msra.mxu1 %v1668_v7 }
 0x690   : > { %3280 = vmatprep.subr.bf16.mxu1 %v3621_v33 }
 0x696   : > { %3269 = vmatmul.mubr.msk.bf16.vlgmr.msra.gmra.mrb[32].mxu1 %vm1140_vm3, %v1656_v9 }
 0x697   : > { %3284 = vmatprep.mubr.msk.bf16.mxu1 %vm3622_vm2, %v3621_v33 }
 0x6aa   : > { %v1536_v11 = vpop.xlane.xlu1 %1535 }
 0x6ab   : > { %3497 = vrcp.f32 %v1536_v11 }
 0x6ae   : > { %v1716_v17 = vpop.permute.xlu1 %1715 }
 0x6af   : > { %v1724_v18 = vsel %vm1140_vm3, %v1716_v17, 0 }
 0x6b2   : > { %v1712_v19 = vpop.permute.xlu1 %1711 }
 0x6b5   : > { %v3498_v12 = vpop.eup %3497 }
 0x6b6   : > { %v1544_v14 = vmul.f32 %v3498_v12, %v3490_v54 }
 0x6b8   : > { %v1546_v15 = vpack.c.bf16 %v1544_v14, %v1543_v13 }
 0x6ba   : > { %3261 = vmatmul.mubr.msk.bf16.vlgmr.msra.gmra.mrb[24].mxu0 %vm1241_vm5, %v1546_v15 }
 0x6bb   : > { %3273 = vmatpush3.bf16.xpose.msra.mxu0 %v1721_v16  ;;  %3276 = vmatprep.mubr.msk.bf16.mxu0 %vm3622_vm2, %v3621_v33 }
 0x6bc   : > { %3274 = vmatprep.subr.bf16.mxu0 %v3621_v33 }
 0x6c3   : > { %3275 = vmatpush3.bf16.xpose.msra.mxu0 %v1724_v18 }
 0x6c4   : > { %3288 = vmatprep.subr.bf16.mxu0 %v3621_v33 }
 0x6ca   : > { %3277 = vmatmul.mubr.msk.bf16.vlgmr.msra.gmra.mrb[28].mxu0 %vm1140_vm3, %v1712_v19 }
 0x6cb   : > { %v4054_v21 = vpop.f32.mrb[20].mxu0  ;;  %3292 = vmatprep.mubr.msk.bf16.mxu0 %vm3622_vm2, %v3621_v33 }
 0x6cc   : > { %v3230_v22 = vpop.f32.mrb[21].mxu0 }
 0x6cd   : > { %v4058_v23 = vpop.f32.mrb[22].mxu0 }
 0x6ce   : > { %v3231_v24 = vpop.f32.mrb[23].mxu0 }
 0x758   : > { %v4060_v26 = vpop.f32.mrb[28].mxu1 }
 0x759   : > { %v3254_v27 = vpop.f32.mrb[29].mxu1 }
 0x75a   : > { %v4062_v28 = vpop.f32.mrb[30].mxu1 }
 0x75b   : > { %v3409_v29 = vpack.i.bf16 %v4062_v28, %v4060_v26  ;;  %v3255_v30 = vpop.f32.mrb[31].mxu1 }
 0x769   : > { %v1704_v31 = vpop.f32.mrb[32].mxu1 }
 0x76a   : > { %v3270_v32 = vpop.f32.mrb[33].mxu1  ;;  %v1767_v34 = vsel %vm1241_vm5, %v1704_v31, -inf }
 0x76b   : > { %1768 = vmax.xlane.f32.xlu0 %v1767_v34  ;;  %v1707_v35 = vpop.f32.mrb[34].mxu1 }
 0x76c   : > { %v3271_v36 = vpop.f32.mrb[35].mxu1  ;;  %v1770_v38 = vsel %vm1241_vm5, %v1707_v35, -inf }
 0x76d   : > { %1771 = vmax.xlane.f32.xlu1 %v1770_v38 }
 0x77e   : > { %1865 = vrot.lane.b32.xlu1 %v3937_v60, %s3624_s27 }
 0x782   : > { %1815 = vrot.lane.b32.xlu1 %v3929_v53, %s3624_s27 }
 0x786   : > { %1867 = vrot.lane.b32.xlu1 %v3939_v63, %s3624_s27 }
 0x78d   : > { %v4074_v40 = vpop.f32.mrb[24].mxu0 }
 0x78e   : > { %v3262_v41 = vpop.f32.mrb[25].mxu0 }
 0x78f   : > { %v4076_v43 = vpop.f32.mrb[26].mxu0 }
 0x790   : > { %v3414_v44 = vpack.i.bf16 %v4076_v43, %v4074_v40  ;;  %v3263_v45 = vpop.f32.mrb[27].mxu0 }
 0x79d   : > { %v1760_v46 = vpop.f32.mrb[28].mxu0 }
 0x79e   : > { %v3278_v48 = vpop.f32.mrb[29].mxu0  ;;  %v1773_v49 = vsel %vm1241_vm5, %v1760_v46, -inf }
 0x79f   : > { %v1763_v50 = vpop.f32.mrb[30].mxu0  ;;  %1774 = vmax.xlane.f32.xlu0 %v1773_v49 }
 0x7a0   : > { %v3279_v52 = vpop.f32.mrb[31].mxu0  ;;  %v1776_v54 = vsel %vm1241_vm5, %v1763_v50, -inf }
 0x7a3   : > { %1777 = vmax.xlane.f32.xlu0 %v1776_v54 }
 0x7b9   : > { %1813 = vrot.lane.b32.xlu0 %v3916_v47, %s3624_s27 }
 0x7f8   : > { %v1769_v56 = vpop.xlane.xlu0 %1768 }
 0x7f9   : > { %v1779_v58 = vsub.f32 %v1704_v31, %v1769_v56 }
 0x7fa   : > { %v1772_v59 = vpop.xlane.xlu1 %1771 }
 0x7fb   : > { %v1783_v61 = vmul.f32 1.442695, %v1779_v58  ;;  %v1780_v62 = vsub.f32 %v1707_v35, %v1772_v59 }
 0x7fd   : > { %3499 = vpow2.f32 %v1783_v61  ;;  %v1785_v0 = vmul.f32 1.442695, %v1780_v62 }
 0x7fe   : > { %v1866_v1 = vpop.permute.xlu1 %1865 }
 0x7ff   : > { %3501 = vpow2.f32 %v1785_v0  ;;  %3289 = vmatpush3.bf16.msra.mxu0 %v1866_v1 }
 0x800   : > { %3290 = vmatprep.subr.bf16.mxu0 %v3621_v33 }
 0x802   : > { %v1816_v2 = vpop.permute.xlu1 %1815 }
 0x803   : > { %v1822_v16 = vsel %vm1291_vm4, %v1816_v2, 0 }
 0x806   : > { %v1868_v3 = vpop.permute.xlu1 %1867 }
 0x807   : > { %v3500_v4 = vpop.eup %3499  ;;  %v1874_v5 = vsel %vm1291_vm4, %v1868_v3, 0 }
 0x808   : > { %3291 = vmatpush3.bf16.msra.mxu0 %v1874_v5  ;;  %v1791_v6 = vsel %vm1241_vm5, %v3500_v4, 0.0 }
 0x809   : > { %v3502_v7 = vpop.eup %3501  ;;  %1792 = vadd.xlane.f32.xlu0 %v1791_v6  ;;  %3304 = vmatprep.subr.bf16.mxu0 %v3621_v33 }
 0x80a   : > { %v1794_v9 = vsel %vm1241_vm5, %v3502_v7, 0.0 }
 0x80b   : > { %1795 = vadd.xlane.f32.xlu1 %v1794_v9 }
 0x81c   : > { %1975 = vrot.lane.b32.xlu1 %v3914_v42, %s3625_s23 }
 0x82c   : > { %v1775_v10 = vpop.xlane.xlu0 %1774 }
 0x82d   : > { %v1781_v11 = vsub.f32 %v1760_v46, %v1775_v10 }
 0x82f   : > { %v1787_v8 = vmul.f32 1.442695, %v1781_v11 }
 0x830   : > { %v1778_v12 = vpop.xlane.xlu0 %1777 }
 0x831   : > { %3503 = vpow2.f32 %v1787_v8  ;;  %v1782_v13 = vsub.f32 %v1763_v50, %v1778_v12 }
 0x833   : > { %v1789_v14 = vmul.f32 1.442695, %v1782_v13 }
 0x834   : > { %v1814_v15 = vpop.permute.xlu0 %1813 }
 0x835   : > { %3505 = vpow2.f32 %v1789_v14  ;;  %3281 = vmatpush3.bf16.msra.mxu1 %v1814_v15 }
 0x836   : > { %3282 = vmatprep.subr.bf16.mxu1 %v3621_v33 }
 0x839   : > { %3283 = vmatpush3.bf16.msra.mxu1 %v1822_v16 }
 0x83a   : > { %3296 = vmatprep.subr.bf16.mxu1 %v3621_v33 }
 0x83b   : > { %v3504_v17 = vpop.eup %3503 }
 0x83c   : > { %v1797_v42 = vsel %vm1241_vm5, %v3504_v17, 0.0 }
 0x83d   : > { %1798 = vadd.xlane.f32.xlu0 %v1797_v42 }
 0x83f   : > { %v3506_v18 = vpop.eup %3505 }
 0x840   : > { %v1800_v19 = vsel %vm1241_vm5, %v3506_v18, 0.0 }
 0x841   : > { %1801 = vadd.xlane.f32.xlu1 %v1800_v19 }
 0x852   : > { %1977 = vrot.lane.b32.xlu1 %v3926_v51, %s3625_s23 }
 0x853   : > { %1919 = vrot.lane.b32.xlu0 %v3900_v20, %s3625_s23 }
 0x856   : > { %1973 = vrot.lane.b32.xlu1 %v3907_v37, %s3625_s23 }
 0x857   : > { %1921 = vrot.lane.b32.xlu0 %v3905_v25, %s3625_s23 }
 0x85b   : > { %1917 = vrot.lane.b32.xlu0 %v3911_v39, %s3625_s23 }
 0x896   : > { %v1793_v22 = vpop.xlane.xlu0 %1792 }
 0x897   : > { %3507 = vrcp.f32 %v1793_v22 }
 0x898   : > { %v1796_v24 = vpop.xlane.xlu1 %1795 }
 0x899   : > { %3509 = vrcp.f32 %v1796_v24 }
 0x89c   : > { %v1976_v20 = vpop.permute.xlu1 %1975 }
 0x89d   : > { %v1983_v49 = vsel %vm1140_vm3, %v1976_v20, 0 }
 0x8a1   : > { %v3508_v27 = vpop.eup %3507 }
 0x8a2   : > { %v1807_v31 = vmul.f32 %v3508_v27, %v3500_v4 }
 0x8a3   : > { %v3510_v30 = vpop.eup %3509 }
 0x8a4   : > { %v1808_v51 = vmul.f32 %v3510_v30, %v3502_v7 }
 0x8a6   : > { %v1811_v32 = vpack.c.bf16 %v1808_v51, %v1807_v31 }
 0x8a8   : > { %3285 = vmatmul.mubr.msk.bf16.vlgmr.msra.gmra.mrb[36].mxu1 %vm1241_vm5, %v1811_v32 }
 0x8a9   : > { %3300 = vmatprep.mubr.msk.bf16.mxu1 %vm3622_vm2, %v3621_v33 }
 0x8ca   : > { %v1799_v37 = vpop.xlane.xlu0 %1798 }
 0x8cb   : > { %3511 = vrcp.f32 %v1799_v37 }
 0x8ce   : > { %v1920_v25 = vpop.permute.xlu0 %1919  ;;  %v1802_v34 = vpop.xlane.xlu1 %1801 }
 0x8cf   : > { %v1927_v39 = vsel %vm1140_vm3, %v1920_v25, 0  ;;  %3513 = vrcp.f32 %v1802_v34 }
 0x8d0   : > { %3297 = vmatpush3.bf16.xpose.msra.mxu1 %v1927_v39 }
 0x8d1   : > { %3298 = vmatprep.subr.bf16.mxu1 %v3621_v33 }
 0x8d2   : > { %v1922_v35 = vpop.permute.xlu0 %1921  ;;  %v1978_v52 = vpop.permute.xlu1 %1977 }
 0x8d3   : > { %v1930_v38 = vsel %vm1140_vm3, %v1922_v35, 0  ;;  %v1986_v54 = vsel %vm1140_vm3, %v1978_v52, 0 }
 0x8d5   : > { %v3512_v36 = vpop.eup %3511 }
 0x8d6   : > { %v1809_v45 = vmul.f32 %v3512_v36, %v3504_v17  ;;  %v1918_v50 = vpop.permute.xlu0 %1917  ;;  %v1974_v56 = vpop.permute.xlu1 %1973 }
 0x8d8   : > { %3299 = vmatpush3.bf16.xpose.msra.mxu1 %v1930_v38 }
 0x8d9   : > { %v3514_v41 = vpop.eup %3513  ;;  %3312 = vmatprep.subr.bf16.mxu1 %v3621_v33 }
 0x8da   : > { %v1810_v46 = vmul.f32 %v3514_v41, %v3506_v18 }
 0x8dc   : > { %v1812_v48 = vpack.c.bf16 %v1810_v46, %v1809_v45 }
 0x8de   : > { %3293 = vmatmul.mubr.msk.bf16.vlgmr.msra.gmra.mrb[32].mxu0 %vm1241_vm5, %v1812_v48 }
 0x8df   : > { %3305 = vmatpush3.bf16.xpose.msra.mxu0 %v1983_v49  ;;  %3301 = vmatmul.mubr.msk.bf16.vlgmr.msra.gmra.mrb[40].mxu1 %vm1140_vm3, %v1918_v50 }
 0x8e0   : > { %3306 = vmatprep.subr.bf16.mxu0 %v3621_v33  ;;  %3308 = vmatprep.mubr.msk.bf16.mxu0 %vm3622_vm2, %v3621_v33 }
 0x8e1   : > { %3316 = vmatprep.mubr.msk.bf16.mxu1 %vm3622_vm2, %v3621_v33 }
 0x8e7   : > { %3307 = vmatpush3.bf16.xpose.msra.mxu0 %v1986_v54 }
 0x8e8   : > { %3320 = vmatprep.subr.bf16.mxu0 %v3621_v33 }
 0x8ee   : > { %3309 = vmatmul.mubr.msk.bf16.vlgmr.msra.gmra.mrb[36].mxu0 %vm1140_vm3, %v1974_v56 }
 0x8ef   : > { %3324 = vmatprep.mubr.msk.bf16.mxu0 %vm3622_vm2, %v3621_v33 }
 0x97b   : > { %v1858_v58 = vpop.f32.mrb[36].mxu1 }
 0x97c   : > { %v3286_v59 = vpop.f32.mrb[37].mxu1 }
 0x97d   : > { %v1861_v61 = vpop.f32.mrb[38].mxu1 }
 0x97e   : > { %v3419_v62 = vpack.i.bf16 %v1861_v61, %v1858_v58  ;;  %v3287_v0 = vpop.f32.mrb[39].mxu1  ;;  %v3445_v61 = vld [vmem:[%s3778_s28] sm:$0xff]  }
 0x9b1   : > { %v1910_v1 = vpop.f32.mrb[32].mxu0 }
 0x9b2   : > { %v3294_v2 = vpop.f32.mrb[33].mxu0  ;;  %v1966_v3 = vpop.f32.mrb[40].mxu1 }
 0x9b3   : > { %v1913_v4 = vpop.f32.mrb[34].mxu0  ;;  %v3302_v5 = vpop.f32.mrb[41].mxu1  ;;  %v2029_v6 = vsel %vm1241_vm5, %v1966_v3, -inf  ;;  %v3447_v2 = vld [vmem:[%s3778_s28 + $0x10] sm:$0xff]  }
 0x9b4   : > { %v3424_v7 = vpack.i.bf16 %v1913_v4, %v1910_v1  ;;  %v3295_v9 = vpop.f32.mrb[35].mxu0  ;;  %2030 = vmax.xlane.f32.xlu0 %v2029_v6  ;;  %v1969_v10 = vpop.f32.mrb[42].mxu1  ;;  %v3448_v6 = vld [vmem:[%s3778_s28 + $0x18] sm:$0xff]  }
 0x9b5   : > { %v3303_v11 = vpop.f32.mrb[43].mxu1  ;;  %v2032_v8 = vsel %vm1241_vm5, %v1969_v10, -inf }
 0x9b6   : > { %2033 = vmax.xlane.f32.xlu1 %v2032_v8 }
 0x9c1   : > { %v2022_v12 = vpop.f32.mrb[36].mxu0 }
 0x9c2   : > { %v3310_v13 = vpop.f32.mrb[37].mxu0  ;;  %v2035_v14 = vsel %vm1241_vm5, %v2022_v12, -inf }
 0x9c3   : > { %v2025_v15 = vpop.f32.mrb[38].mxu0  ;;  %2036 = vmax.xlane.f32.xlu0 %v2035_v14 }
 0x9c4   : > { %v3311_v16 = vpop.f32.mrb[39].mxu0  ;;  %v2038_v17 = vsel %vm1241_vm5, %v2025_v15, -inf }
 0x9c7   : > { %2039 = vmax.xlane.f32.xlu0 %v2038_v17 }
 0xa41   : > { %v2031_v42 = vpop.xlane.xlu0 %2030 }
 0xa42   : > { %v2041_v18 = vsub.f32 %v1966_v3, %v2031_v42 }
 0xa43   : > { %v2034_v19 = vpop.xlane.xlu1 %2033 }
 0xa44   : > { %v2045_v22 = vmul.f32 1.442695, %v2041_v18  ;;  %v2042_v24 = vsub.f32 %v1969_v10, %v2034_v19 }
 0xa46   : > { %3515 = vpow2.f32 %v2045_v22  ;;  %v2047_v27 = vmul.f32 1.442695, %v2042_v24 }
 0xa48   : > { %3517 = vpow2.f32 %v2047_v27 }
 0xa50   : > { %v3516_v30 = vpop.eup %3515  ;;  %v2037_v31 = vpop.xlane.xlu0 %2036 }
 0xa51   : > { %v2043_v51 = vsub.f32 %v2022_v12, %v2037_v31  ;;  %v2053_v32 = vsel %vm1241_vm5, %v3516_v30, 0.0 }
 0xa52   : > { %v3518_v20 = vpop.eup %3517  ;;  %2054 = vadd.xlane.f32.xlu0 %v2053_v32 }
 0xa53   : > { %v2049_v37 = vmul.f32 1.442695, %v2043_v51  ;;  %v2056_v25 = vsel %vm1241_vm5, %v3518_v20, 0.0 }
 0xa54   : > { %2057 = vadd.xlane.f32.xlu1 %v2056_v25  ;;  %v2040_v35 = vpop.xlane.xlu0 %2039 }
 0xa55   : > { %3519 = vpow2.f32 %v2049_v37  ;;  %v2044_v36 = vsub.f32 %v2025_v15, %v2040_v35 }
 0xa57   : > { %v2051_v38 = vmul.f32 1.442695, %v2044_v36 }
 0xa59   : > { %3521 = vpow2.f32 %v2051_v38 }
 0xa5f   : > { %v3520_v34 = vpop.eup %3519 }
 0xa60   : > { %v2059_v39 = vsel %vm1241_vm5, %v3520_v34, 0.0 }
 0xa61   : > { %2060 = vadd.xlane.f32.xlu0 %v2059_v39 }
 0xa63   : > { %v3522_v41 = vpop.eup %3521 }
 0xa65   : > { %2127 = vrot.lane.b32.xlu1 %v3937_v60, %s3625_s23  ;;  %v2062_v60 = vsel %vm1241_vm5, %v3522_v41, 0.0 }
 0xa69   : > { %2077 = vrot.lane.b32.xlu1 %v3929_v53, %s3625_s23 }
 0xa77   : > { %2075 = vrot.lane.b32.xlu0 %v3916_v47, %s3625_s23 }
 0xa7b   : > { %3410 = vrot.lane.b32.xlu0 %v3409_v29, %s3626_s25 }
 0xa7f   : > { %3420 = vrot.lane.b32.xlu0 %v3419_v62, %s3627_s17  ;;  %v3446_v62 = vld [vmem:[%s3778_s28 + $0x8] sm:$0xff]  }
 0xa8d   : > { %2063 = vadd.xlane.f32.xlu1 %v2062_v60 }
 0xa9e   : > { %2129 = vrot.lane.b32.xlu1 %v3939_v63, %s3625_s23 }
 0xaa2   : > { %3415 = vrot.lane.b32.xlu1 %v3414_v44, %s3626_s25 }
 0xaa6   : > { %3425 = vrot.lane.b32.xlu1 %v3424_v7, %s3627_s17 }
 0xadf   : > { %v2055_v45 = vpop.xlane.xlu0 %2054 }
 0xae1   : > { %v2058_v47 = vpop.xlane.xlu1 %2057 }
 0xae2   : > { %3523 = vrcp.f32 %v2058_v47 }
 0xae3   : > { %3525 = vrcp.f32 %v2055_v45 }
 0xae5   : > { %v2128_v53 = vpop.permute.xlu1 %2127 }
 0xae6   : > { %3321 = vmatpush3.bf16.msra.mxu0 %v2128_v53 }
 0xae7   : > { %3322 = vmatprep.subr.bf16.mxu0 %v3621_v33 }
 0xae9   : > { %v2078_v48 = vpop.permute.xlu1 %2077 }
 0xaea   : > { %v2084_v43 = vsel %vm1291_vm4, %v2078_v48, 0 }
 0xaec   : > { %v3524_v28 = vpop.eup %3523 }
 0xaed   : > { %v3526_v46 = vpop.eup %3525  ;;  %v2070_v63 = vmul.f32 %v3524_v28, %v3518_v20 }
 0xaee   : > { %v2061_v26 = vpop.xlane.xlu0 %2060  ;;  %v2069_v40 = vmul.f32 %v3526_v46, %v3516_v30 }
 0xaef   : > { %3527 = vrcp.f32 %v2061_v26 }
 0xaf0   : > { %v2073_v44 = vpack.c.bf16 %v2070_v63, %v2069_v40 }
 0xaf2   : > { %v2076_v29 = vpop.permute.xlu0 %2075 }
 0xaf3   : > { %3313 = vmatpush3.bf16.msra.mxu1 %v2076_v29 }
 0xaf4   : > { %3314 = vmatprep.subr.bf16.mxu1 %v3621_v33 }
 0xaf6   : > { %v3411_v12 = vpop.permute.xlu0 %3410 }
 0xaf7   : > { %3315 = vmatpush3.bf16.msra.mxu1 %v2084_v43  ;;  %v3413_v14 = vunpack.i.h.bf16 %v3411_v12  ;;  %v3412_v15 = vunpack.i.l.bf16 %v3411_v12 }
 0xaf8   : > { %3328 = vmatprep.subr.bf16.mxu1 %v3445_v61 }
 0xaf9   : > { %v3528_v54 = vpop.eup %3527  ;;  %v2228_v18 = vsel %vm1140_vm3, %v3998_v57, %v3413_v14  ;;  %v2227_v19 = vsel %vm1140_vm3, %v3996_v55, %v3412_v15 }
 0xafa   : > { %3317 = vmatmul.mubr.msk.bf16.vlgmr.msra.gmra.mrb[44].mxu1 %vm1241_vm5, %v2073_v44  ;;  %v2071_v33 = vmul.f32 %v3528_v54, %v3520_v34  ;;  %v3421_v13 = vpop.permute.xlu0 %3420 }
 0xafb   : > { %3329 = vmatpush3.bf16.msra.mxu1 %v3445_v61  ;;  %v3423_v16 = vunpack.i.h.bf16 %v3421_v13  ;;  %v3422_v17 = vunpack.i.l.bf16 %v3421_v13 }
 0xafc   : > { %3330 = vmatprep.subr.bf16.mxu1 %v3446_v62 }
 0xafd   : > { %v2231_v27 = vsel %vm825_vm1, %v2227_v19, %v3422_v17  ;;  %v2232_v30 = vsel %vm825_vm1, %v2228_v18, %v3423_v16 }
 0xaff   : > { %3331 = vmatpush3.bf16.msra.mxu1 %v3446_v62 }
 0xb00   : > { %3332 = vmatprep.subr.bf16.mxu1 %v3447_v2 }
 0xb03   : > { %3333 = vmatpush3.bf16.msra.mxu1 %v3447_v2 }
 0xb04   : > { %3334 = vmatprep.subr.bf16.mxu1 %v3448_v6 }
 0xb07   : > { %3335 = vmatpush3.bf16.msra.mxu1 %v3448_v6 }
 0xb1a   : > { %v2064_v49 = vpop.xlane.xlu1 %2063 }
 0xb1b   : > { %3529 = vrcp.f32 %v2064_v49 }
 0xb1e   : > { %v2130_v50 = vpop.permute.xlu1 %2129 }
 0xb1f   : > { %v2136_v52 = vsel %vm1291_vm4, %v2130_v50, 0 }
 0xb20   : > { %3323 = vmatpush3.bf16.msra.mxu0 %v2136_v52 }
 0xb22   : > { %v3416_v20 = vpop.permute.xlu1 %3415 }
 0xb23   : > { %v3418_v57 = vunpack.i.h.bf16 %v3416_v20  ;;  %v3417_v25 = vunpack.i.l.bf16 %v3416_v20 }
 0xb25   : > { %v3530_v56 = vpop.eup %3529  ;;  %v2230_v35 = vsel %vm1140_vm3, %v4058_v23, %v3418_v57  ;;  %v2229_v36 = vsel %vm1140_vm3, %v4054_v21, %v3417_v25  ;;  %v3563_v25 = vld [vmem:[#allocation2] sm:$0xff] }
 0xb26   : > { %v2072_v58 = vmul.f32 %v3530_v56, %v3522_v41  ;;  %v3426_v37 = vpop.permute.xlu1 %3425 }
 0xb27   : > { %v3428_v34 = vunpack.i.h.bf16 %v3426_v37  ;;  %v3427_v55 = vunpack.i.l.bf16 %v3426_v37 }
 0xb28   : > { %v2074_v59 = vpack.c.bf16 %v2072_v58, %v2071_v33 }
 0xb29   : > { %v2233_v60 = vsel %vm825_vm1, %v2229_v36, %v3427_v55  ;;  %v2234_v47 = vsel %vm825_vm1, %v2230_v35, %v3428_v34 }
 0xb2a   : > { %3325 = vmatmul.mubr.msk.bf16.vlgmr.msra.gmra.mrb[40].mxu0 %vm1241_vm5, %v2074_v59 }
 0xbcd   : > { %v2120_v0 = vpop.f32.mrb[44].mxu1 }
 0xbce   : > { %v3318_v1 = vpop.f32.mrb[45].mxu1 }
 0xbcf   : > { %v2123_v3 = vpop.f32.mrb[46].mxu1 }
 0xbd0   : > { %v3429_v4 = vpack.i.bf16 %v2123_v3, %v2120_v0  ;;  %v3319_v5 = vpop.f32.mrb[47].mxu1 }
 0xbd2   : > { %3430 = vrot.lane.b32.xlu0 %v3429_v4, %s3628_s0 }
 0xbfd   : > { %v2172_v7 = vpop.f32.mrb[40].mxu0 }
 0xbfe   : > { %v3326_v9 = vpop.f32.mrb[41].mxu0 }
 0xbff   : > { %v2175_v10 = vpop.f32.mrb[42].mxu0 }
 0xc00   : > { %v3434_v11 = vpack.i.bf16 %v2175_v10, %v2172_v7  ;;  %v3327_v8 = vpop.f32.mrb[43].mxu0 }
 0xc02   : > { %3435 = vrot.lane.b32.xlu1 %v3434_v11, %s3628_s0 }
 0xc44   : > { %v3431_v42 = vpop.permute.xlu0 %3430 }
 0xc45   : > { %v3433_v22 = vunpack.i.h.bf16 %v3431_v42  ;;  %v3432_v24 = vunpack.i.l.bf16 %v3431_v42 }
 0xc47   : > { %v2237_v31 = vsel %vm2235_vm6, %v2232_v30, %v3433_v22  ;;  %v2236_v51 = vsel %vm2235_vm6, %v2231_v27, %v3432_v24  ;;  %v3051_v22 = vld [vmem:[%s4339_s9] ss:$0 sm:$0xff] }
 0xc48   : > { %v2240_v32 = vpack.c.bf16 %v2237_v31, %v2236_v51  ;;  %v3052_v30 = vld [vmem:[%s767_s2] ss:$0 sm:$0xff] }
 0xc4a   : > { %3336 = vmatprep.mubr.msk.bf16.mxu1 %vm2274_vm7, %v2240_v32 }
 0xc74   : > { %v3436_v39 = vpop.permute.xlu1 %3435 }
 0xc75   : > { %v3438_v38 = vunpack.i.h.bf16 %v3436_v39  ;;  %v3437_v41 = vunpack.i.l.bf16 %v3436_v39 }
 0xc77   : > { %v2238_v53 = vsel %vm2235_vm6, %v2233_v60, %v3437_v41  ;;  %v2239_v45 = vsel %vm2235_vm6, %v2234_v47, %v3438_v38  ;;  %v3564_v38 = vld [vmem:[#allocation2 + $0x8] sm:$0xff] }
 0xc78   : > { %v2241_v26 = vpack.c.bf16 %v2239_v45, %v2238_v53  ;;  %v3565_v45 = vld [vmem:[#allocation2 + $0x10] sm:$0xff] }
 0xc7a   : > { %3337 = vmatmul.mubr.msk.bf16.vlgmr.msra.gmra.mrb[48].mxu1 %vm2274_vm7, %v2241_v26 }
 0xd4d   : > { %v3338_v28 = vpop.f32.mrb[48].mxu1 }
 0xd4e   : > { %v2315_v29 = vpop.f32.mrb[49].mxu1  ;;  %v2338_v63 = vsel %vm825_vm1, %v3338_v28, 0.0 }
 0xd4f   : > { %v3339_v46 = vpop.f32.mrb[50].mxu1  ;;  %v2332_v23 = vsel %vm825_vm1, %v2315_v29, 0.0 }
 0xd50   : > { %2333 = vadd.xlane.f32.xlu0 %v2332_v23  ;;  %v2318_v21 = vpop.f32.mrb[51].mxu1  ;;  %v2341_v40 = vsel %vm825_vm1, %v3339_v46, 0.0  ;;  %v3566_v23 = vld [vmem:[#allocation2 + $0x18] sm:$0xff] }
 0xd51   : > { %v2335_v48 = vsel %vm825_vm1, %v2318_v21, 0.0 }
 0xd52   : > { %2336 = vadd.xlane.f32.xlu1 %v2335_v48 }
 0xd54   : > { %2339 = vadd.xlane.f32.xlu0 %v2338_v63 }
 0xd58   : > { %2342 = vadd.xlane.f32.xlu0 %v2341_v40 }
 0xddd   : > { %v2334_v43 = vpop.xlane.xlu0 %2333 }
 0xdde   : > { %v2344_v44 = vmul.f32 0.03125, %v2334_v43 }
 0xddf   : > { %v2337_v49 = vpop.xlane.xlu1 %2336 }
 0xde0   : > { %v2348_v50 = vsub.f32 %v2315_v29, %v2344_v44  ;;  %v2345_v52 = vmul.f32 0.03125, %v2337_v49 }
 0xde1   : > { %v2340_v54 = vpop.xlane.xlu0 %2339 }
 0xde2   : > { %v2349_v56 = vsub.f32 %v2318_v21, %v2345_v52  ;;  %v2346_v33 = vmul.f32 0.03125, %v2340_v54  ;;  %v2352_v58 = vmul.f32 %v2348_v50, %v2348_v50 }
 0xde4   : > { %v2350_v59 = vsub.f32 %v3338_v28, %v2346_v33  ;;  %v2356_v61 = vsel %vm825_vm1, %v2352_v58, 0.0  ;;  %v2353_v62 = vmul.f32 %v2349_v56, %v2349_v56 }
 0xde5   : > { %2357 = vadd.xlane.f32.xlu0 %v2356_v61  ;;  %v2343_v0 = vpop.xlane.xlu0 %2342 }
 0xde6   : > { %v2347_v1 = vmul.f32 0.03125, %v2343_v0  ;;  %v2359_v2 = vsel %vm825_vm1, %v2353_v62, 0.0  ;;  %v2354_v3 = vmul.f32 %v2350_v59, %v2350_v59 }
 0xde7   : > { %2360 = vadd.xlane.f32.xlu1 %v2359_v2 }
 0xde8   : > { %v2351_v4 = vsub.f32 %v3339_v46, %v2347_v1  ;;  %v2362_v5 = vsel %vm825_vm1, %v2354_v3, 0.0 }
 0xde9   : > { %2363 = vadd.xlane.f32.xlu0 %v2362_v5 }
 0xdea   : > { %v2355_v6 = vmul.f32 %v2351_v4, %v2351_v4 }
 0xdec   : > { %v2365_v7 = vsel %vm825_vm1, %v2355_v6, 0.0  ;;  %v3449_v6 = vld [vmem:[%s3795_s8] sm:$0xff]  }
 0xded   : > { %2366 = vadd.xlane.f32.xlu1 %v2365_v7  ;;  %3340 = vmatprep.subr.bf16.mxu0 %v3449_v6  ;;  %v3450_v7 = vld [vmem:[%s3795_s8 + $0x8] sm:$0xff]  }
 0xdee   : > { %3341 = vmatpush3.bf16.msra.mxu0 %v3449_v6 }
 0xdef   : > { %3342 = vmatprep.subr.bf16.mxu0 %v3450_v7 }
 0xdf2   : > { %3343 = vmatpush3.bf16.msra.mxu0 %v3450_v7 }
 0xe72   : > { %v2358_v9 = vpop.xlane.xlu0 %2357 }
 0xe73   : > { %v2368_v10 = vmul.f32 0.03125, %v2358_v9 }
 0xe74   : > { %v2361_v11 = vpop.xlane.xlu1 %2360 }
 0xe75   : > { %v2372_v8 = vadd.f32 1e-05, %v2368_v10  ;;  %v2369_v12 = vmul.f32 0.03125, %v2361_v11 }
 0xe76   : > { %v2364_v13 = vpop.xlane.xlu0 %2363 }
 0xe77   : > { %3531 = vrsqrt.f32 %v2372_v8  ;;  %v2373_v14 = vadd.f32 1e-05, %v2369_v12  ;;  %v2370_v15 = vmul.f32 0.03125, %v2364_v13 }
 0xe79   : > { %3533 = vrsqrt.f32 %v2373_v14  ;;  %v2374_v16 = vadd.f32 1e-05, %v2370_v15 }
 0xe7a   : > { %v2367_v17 = vpop.xlane.xlu1 %2366 }
 0xe7b   : > { %3535 = vrsqrt.f32 %v2374_v16  ;;  %v2371_v42 = vmul.f32 0.03125, %v2367_v17 }
 0xe7d   : > { %v2375_v18 = vadd.f32 1e-05, %v2371_v42 }
 0xe7f   : > { %3537 = vrsqrt.f32 %v2375_v18 }
 0xe81   : > { %v3532_v19 = vpop.eup %3531 }
 0xe82   : > { %v2380_v24 = vmul.f32 %v3532_v19, %v2348_v50 }
 0xe83   : > { %v3534_v27 = vpop.eup %3533 }
 0xe84   : > { %v2390_v31 = vmul.f32 %v3051_v22, %v2380_v24  ;;  %v2381_v51 = vmul.f32 %v3534_v27, %v2349_v56  ;;  %v3053_v27 = vld [vmem:[%s770_s5] ss:$0 sm:$0xff] }
 0xe85   : > { %v3536_v32 = vpop.eup %3535 }
 0xe86   : > { %v2400_v20 = vadd.f32 %v3052_v30, %v2390_v31  ;;  %v2391_v37 = vmul.f32 %v3051_v22, %v2381_v51  ;;  %v2382_v57 = vmul.f32 %v3536_v32, %v2350_v59 }
 0xe88   : > { %v4194_v34 = vadd.f32 %v3563_v25, %v2400_v20  ;;  %v2401_v55 = vadd.f32 %v3052_v30, %v2391_v37  ;;  %v2392_v39 = vmul.f32 %v3051_v22, %v2382_v57 }
 0xe89   : > { %v3538_v35 = vpop.eup %3537 }
 0xe8a   : > { %v2409_v36 = vsel %vm825_vm1, %v4194_v34, 0.0  ;;  %v4198_v41 = vadd.f32 %v3564_v38, %v2401_v55  ;;  %v2402_v60 = vadd.f32 %v3052_v30, %v2392_v39  ;;  %v2383_v47 = vmul.f32 %v3538_v35, %v2351_v4 }
 0xe8b   : > { %2410 = vadd.xlane.f32.xlu0 %v2409_v36 }
 0xe8c   : > { %v2412_v53 = vsel %vm825_vm1, %v4198_v41, 0.0  ;;  %v4202_v26 = vadd.f32 %v3565_v45, %v2402_v60  ;;  %v2393_v28 = vmul.f32 %v3051_v22, %v2383_v47 }
 0xe8d   : > { %2413 = vadd.xlane.f32.xlu1 %v2412_v53 }
 0xe8e   : > { %v2415_v29 = vsel %vm825_vm1, %v4202_v26, 0.0  ;;  %v2403_v46 = vadd.f32 %v3052_v30, %v2393_v28 }
 0xe8f   : > { %2416 = vadd.xlane.f32.xlu0 %v2415_v29 }
 0xe90   : > { %v4206_v21 = vadd.f32 %v3566_v23, %v2403_v46 }
 0xe92   : > { %v2418_v48 = vsel %vm825_vm1, %v4206_v21, 0.0 }
 0xe93   : > { %2419 = vadd.xlane.f32.xlu1 %v2418_v48 }
 0xf18   : > { %v2411_v63 = vpop.xlane.xlu0 %2410 }
 0xf19   : > { %v2421_v40 = vmul.f32 0.03125, %v2411_v63 }
 0xf1a   : > { %v2414_v43 = vpop.xlane.xlu1 %2413 }
 0xf1b   : > { %v2425_v44 = vsub.f32 %v4194_v34, %v2421_v40  ;;  %v2422_v49 = vmul.f32 0.03125, %v2414_v43 }
 0xf1c   : > { %v2417_v50 = vpop.xlane.xlu0 %2416 }
 0xf1d   : > { %v2426_v52 = vsub.f32 %v4198_v41, %v2422_v49  ;;  %v2423_v54 = vmul.f32 0.03125, %v2417_v50  ;;  %v2429_v56 = vmul.f32 %v2425_v44, %v2425_v44 }
 0xf1f   : > { %v2427_v33 = vsub.f32 %v4202_v26, %v2423_v54  ;;  %v2433_v58 = vsel %vm825_vm1, %v2429_v56, 0.0  ;;  %v2430_v59 = vmul.f32 %v2426_v52, %v2426_v52 }
 0xf20   : > { %2434 = vadd.xlane.f32.xlu0 %v2433_v58  ;;  %v2420_v61 = vpop.xlane.xlu1 %2419 }
 0xf21   : > { %v2424_v62 = vmul.f32 0.03125, %v2420_v61  ;;  %v2436_v0 = vsel %vm825_vm1, %v2430_v59, 0.0  ;;  %v2431_v1 = vmul.f32 %v2427_v33, %v2427_v33 }
 0xf22   : > { %2437 = vadd.xlane.f32.xlu1 %v2436_v0 }
 0xf23   : > { %v2428_v2 = vsub.f32 %v4206_v21, %v2424_v62  ;;  %v2439_v3 = vsel %vm825_vm1, %v2431_v1, 0.0 }
 0xf24   : > { %2440 = vadd.xlane.f32.xlu0 %v2439_v3 }
 0xf25   : > { %v2432_v4 = vmul.f32 %v2428_v2, %v2428_v2 }
 0xf27   : > { %v2442_v5 = vsel %vm825_vm1, %v2432_v4, 0.0 }
 0xf28   : > { %2443 = vadd.xlane.f32.xlu1 %v2442_v5 }
 0xfad   : > { %v2435_v9 = vpop.xlane.xlu0 %2434 }
 0xfae   : > { %v2445_v10 = vmul.f32 0.03125, %v2435_v9 }
 0xfaf   : > { %v2438_v11 = vpop.xlane.xlu1 %2437 }
 0xfb0   : > { %v2449_v8 = vadd.f32 1e-05, %v2445_v10  ;;  %v2446_v12 = vmul.f32 0.03125, %v2438_v11 }
 0xfb1   : > { %v2441_v13 = vpop.xlane.xlu0 %2440 }
 0xfb2   : > { %3539 = vrsqrt.f32 %v2449_v8  ;;  %v2450_v14 = vadd.f32 1e-05, %v2446_v12  ;;  %v2447_v15 = vmul.f32 0.03125, %v2441_v13 }
 0xfb4   : > { %3541 = vrsqrt.f32 %v2450_v14  ;;  %v2451_v16 = vadd.f32 1e-05, %v2447_v15  ;;  %v3451_v15 = vld [vmem:[%s3805_s16] sm:$0xff]  }
 0xfb5   : > { %v2444_v17 = vpop.xlane.xlu1 %2443  ;;  %3348 = vmatprep.subr.bf16.mxu0 %v3451_v15 }
 0xfb6   : > { %3543 = vrsqrt.f32 %v2451_v16  ;;  %v2448_v42 = vmul.f32 0.03125, %v2444_v17  ;;  %v3452_v16 = vld [vmem:[%s3805_s16 + $0x8] sm:$0xff]  }
 0xfb8   : > { %v2452_v18 = vadd.f32 1e-05, %v2448_v42 }
 0xfba   : > { %3545 = vrsqrt.f32 %v2452_v18 }
 0xfbc   : > { %v3540_v19 = vpop.eup %3539 }
 0xfbd   : > { %v2457_v22 = vmul.f32 %v3540_v19, %v2425_v44 }
 0xfbe   : > { %v3542_v24 = vpop.eup %3541 }
 0xfbf   : > { %v2458_v30 = vmul.f32 %v3542_v24, %v2426_v52  ;;  %v2467_v51 = vmul.f32 %v3053_v27, %v2457_v22 }
 0xfc0   : > { %v3544_v31 = vpop.eup %3543 }
 0xfc1   : > { %v2468_v32 = vmul.f32 %v3053_v27, %v2458_v30  ;;  %v2459_v20 = vmul.f32 %v3544_v31, %v2427_v33 }
 0xfc3   : > { %v2471_v37 = vpack.c.bf16 %v2468_v32, %v2467_v51  ;;  %v2469_v55 = vmul.f32 %v3053_v27, %v2459_v20 }
 0xfc4   : > { %v3546_v57 = vpop.eup %3545 }
 0xfc5   : > { %v2460_v25 = vmul.f32 %v3546_v57, %v2428_v2  ;;  %3344 = vmatprep.mubr.msk.bf16.mxu0 %vm825_vm1, %v2471_v37 }
 0xfc7   : > { %v2470_v39 = vmul.f32 %v3053_v27, %v2460_v25 }
 0xfc9   : > { %v2472_v35 = vpack.c.bf16 %v2470_v39, %v2469_v55  ;;  %v3453_v39 = vld [vmem:[%s3805_s16 + $0x10] sm:$0xff]  }
 0xfcb   : > { %3345 = vmatmul.mubr.msk.bf16.vlgmr.msra.gmra.mrb[44].mxu0 %vm825_vm1, %v2472_v35  ;;  %v3454_v35 = vld [vmem:[%s3805_s16 + $0x18] sm:$0xff]  }
 0xfcc   : > { %3349 = vmatpush3.bf16.msra.mxu0 %v3451_v15 }
 0xfcd   : > { %3350 = vmatprep.subr.bf16.mxu0 %v3452_v16 }
 0xfd0   : > { %3351 = vmatpush3.bf16.msra.mxu0 %v3452_v16 }
 0xfd1   : > { %3352 = vmatprep.subr.bf16.mxu0 %v3453_v39 }
 0xfd4   : > { %3353 = vmatpush3.bf16.msra.mxu0 %v3453_v39 }
 0xfd5   : > { %3354 = vmatprep.subr.bf16.mxu0 %v3454_v35 }
 0xfd8   : > { %3355 = vmatpush3.bf16.msra.mxu0 %v3454_v35 }
0x109e   : > { %v3346_v36 = vpop.f32.mrb[44].mxu0 }
0x109f   : > { %v2550_v38 = vmul.f32 0.044715, %v3346_v36  ;;  %v2529_v60 = vpop.f32.mrb[45].mxu0  ;;  %v2546_v11 = vmul.f32 0.5, %v3346_v36 }
0x10a0   : > { %v2548_v47 = vmul.f32 0.044715, %v2529_v60  ;;  %v3347_v53 = vpop.f32.mrb[46].mxu0  ;;  %v2544_v2 = vmul.f32 0.5, %v2529_v60 }
0x10a1   : > { %v2554_v45 = vmul.f32 %v3346_v36, %v2550_v38  ;;  %v2551_v28 = vmul.f32 0.044715, %v3347_v53  ;;  %v2532_v29 = vpop.f32.mrb[47].mxu0  ;;  %v2547_v13 = vmul.f32 0.5, %v3347_v53  ;;  %v3456_v38 = vld [vmem:[%s3805_s16 + $0x28] sm:$0xff]  }
0x10a2   : > { %v2552_v46 = vmul.f32 %v2548_v47, %v2529_v60  ;;  %v2549_v23 = vmul.f32 0.044715, %v2532_v29  ;;  %v2545_v6 = vmul.f32 0.5, %v2532_v29  ;;  %v3458_v47 = vld [vmem:[%s3805_s16 + $0x38] sm:$0xff]  }
0x10a3   : > { %v2558_v48 = vmul.f32 %v3346_v36, %v2554_v45  ;;  %v2555_v63 = vmul.f32 %v3347_v53, %v2551_v28 }
0x10a4   : > { %v2556_v40 = vmul.f32 %v2552_v46, %v2529_v60  ;;  %v2553_v43 = vmul.f32 %v2549_v23, %v2532_v29 }
0x10a5   : > { %v2559_v44 = vmul.f32 %v3347_v53, %v2555_v63  ;;  %v2562_v49 = vadd.f32 %v3346_v36, %v2558_v48  ;;  %v3455_v36 = vld [vmem:[%s3805_s16 + $0x20] sm:$0xff]  }
0x10a6   : > { %v2557_v50 = vmul.f32 %v2553_v43, %v2532_v29  ;;  %v2560_v52 = vadd.f32 %v2556_v40, %v2529_v60  ;;  %3356 = vmatprep.subr.bf16.mxu0 %v3455_v36  ;;  %v3457_v60 = vld [vmem:[%s3805_s16 + $0x30] sm:$0xff]  }
0x10a7   : > { %v2566_v54 = vmul.f32 0.7978846, %v2562_v49  ;;  %v2563_v56 = vadd.f32 %v3347_v53, %v2559_v44  ;;  %3357 = vmatpush3.bf16.msra.mxu0 %v3455_v36 }
0x10a8   : > { %v2564_v33 = vmul.f32 0.7978846, %v2560_v52  ;;  %v2561_v58 = vadd.f32 %v2557_v50, %v2532_v29  ;;  %3358 = vmatprep.subr.bf16.mxu0 %v3456_v38 }
0x10a9   : > { %3547 = vtanh.f32 %v2566_v54  ;;  %v2567_v59 = vmul.f32 0.7978846, %v2563_v56  ;;  %v3058_v56 = vld [vmem:[%s4340_s30] ss:$0 sm:$0xff] }
0x10aa   : > { %3549 = vtanh.f32 %v2564_v33  ;;  %v2565_v61 = vmul.f32 0.7978846, %v2561_v58 }
0x10ab   : > { %3551 = vtanh.f32 %v2567_v59  ;;  %3359 = vmatpush3.bf16.msra.mxu0 %v3456_v38 }
0x10ac   : > { %3553 = vtanh.f32 %v2565_v61  ;;  %3360 = vmatprep.subr.bf16.mxu0 %v3457_v60 }
0x10af   : > { %3361 = vmatpush3.bf16.msra.mxu0 %v3457_v60 }
0x10b0   : > { %3362 = vmatprep.subr.bf16.mxu0 %v3458_v47 }
0x10b3   : > { %v3548_v62 = vpop.eup %3547  ;;  %3363 = vmatpush3.bf16.msra.mxu0 %v3458_v47 }
0x10b4   : > { %v3550_v0 = vpop.eup %3549  ;;  %v2574_v9 = vadd.f32 1.0, %v3548_v62 }
0x10b5   : > { %v3552_v1 = vpop.eup %3551  ;;  %v2572_v3 = vadd.f32 1.0, %v3550_v0 }
0x10b6   : > { %v3554_v4 = vpop.eup %3553  ;;  %v2575_v8 = vadd.f32 1.0, %v3552_v1  ;;  %v2578_v12 = vmul.f32 %v2574_v9, %v2546_v11 }
0x10b7   : > { %v2576_v5 = vmul.f32 %v2572_v3, %v2544_v2  ;;  %v2573_v7 = vadd.f32 1.0, %v3554_v4 }
0x10b8   : > { %v2579_v14 = vmul.f32 %v2575_v8, %v2547_v13 }
0x10b9   : > { %2581 = vadd.xlane.f32.xlu0 %v2576_v5  ;;  %v2577_v10 = vmul.f32 %v2573_v7, %v2545_v6 }
0x10bb   : > { %2583 = vadd.xlane.f32.xlu1 %v2577_v10 }
0x10bd   : > { %2585 = vadd.xlane.f32.xlu0 %v2578_v12 }
0x10bf   : > { %2587 = vadd.xlane.f32.xlu1 %v2579_v14 }
0x1146   : > { %v2582_v17 = vpop.xlane.xlu0 %2581 }
0x1147   : > { %v2590_v42 = vmul.f32 0.0078125, %v2582_v17 }
0x1148   : > { %v2584_v18 = vpop.xlane.xlu1 %2583 }
0x1149   : > { %v2594_v19 = vsub.f32 %v2576_v5, %v2590_v42  ;;  %v2591_v22 = vmul.f32 0.0078125, %v2584_v18 }
0x114a   : > { %v2586_v24 = vpop.xlane.xlu0 %2585 }
0x114b   : > { %v2595_v27 = vsub.f32 %v2577_v10, %v2591_v22  ;;  %v2592_v30 = vmul.f32 0.0078125, %v2586_v24  ;;  %v2598_v31 = vmul.f32 %v2594_v19, %v2594_v19 }
0x114c   : > { %v2588_v51 = vpop.xlane.xlu1 %2587 }
0x114d   : > { %v2596_v32 = vsub.f32 %v2578_v12, %v2592_v30  ;;  %v2593_v20 = vmul.f32 0.0078125, %v2588_v51  ;;  %2602 = vadd.xlane.f32.xlu0 %v2598_v31  ;;  %v2599_v37 = vmul.f32 %v2595_v27, %v2595_v27 }
0x114f   : > { %v2597_v57 = vsub.f32 %v2579_v14, %v2593_v20  ;;  %2604 = vadd.xlane.f32.xlu1 %v2599_v37  ;;  %v2600_v25 = vmul.f32 %v2596_v32, %v2596_v32 }
0x1151   : > { %2606 = vadd.xlane.f32.xlu0 %v2600_v25  ;;  %v2601_v55 = vmul.f32 %v2597_v57, %v2597_v57 }
0x1153   : > { %2608 = vadd.xlane.f32.xlu1 %v2601_v55 }
0x11da   : > { %v2603_v53 = vpop.xlane.xlu0 %2602 }
0x11db   : > { %v2610_v45 = vmul.f32 0.0078125, %v2603_v53 }
0x11dc   : > { %v2605_v28 = vpop.xlane.xlu1 %2604 }
0x11dd   : > { %v2614_v29 = vadd.f32 1e-05, %v2610_v45  ;;  %v2611_v46 = vmul.f32 0.0078125, %v2605_v28 }
0x11de   : > { %v2607_v23 = vpop.xlane.xlu0 %2606 }
0x11df   : > { %3555 = vrsqrt.f32 %v2614_v29  ;;  %v2615_v48 = vadd.f32 1e-05, %v2611_v46  ;;  %v2612_v63 = vmul.f32 0.0078125, %v2607_v23 }
0x11e0   : > { %v2609_v40 = vpop.xlane.xlu1 %2608 }
0x11e1   : > { %3557 = vrsqrt.f32 %v2615_v48  ;;  %v2616_v43 = vadd.f32 1e-05, %v2612_v63  ;;  %v2613_v44 = vmul.f32 0.0078125, %v2609_v40 }
0x11e3   : > { %3559 = vrsqrt.f32 %v2616_v43  ;;  %v2617_v49 = vadd.f32 1e-05, %v2613_v44 }
0x11e5   : > { %3561 = vrsqrt.f32 %v2617_v49 }
0x11e9   : > { %v3556_v50 = vpop.eup %3555 }
0x11ea   : > { %v2622_v52 = vmul.f32 %v3556_v50, %v2594_v19 }
0x11eb   : > { %v3558_v54 = vpop.eup %3557 }
0x11ec   : > { %v2623_v33 = vmul.f32 %v3558_v54, %v2595_v27  ;;  %v2632_v59 = vmul.f32 %v3058_v56, %v2622_v52 }
0x11ed   : > { %v3560_v58 = vpop.eup %3559 }
0x11ee   : > { %v2633_v61 = vmul.f32 %v3058_v56, %v2623_v33  ;;  %v2624_v62 = vmul.f32 %v3560_v58, %v2596_v32 }
0x11ef   : > { %v3562_v0 = vpop.eup %3561 }
0x11f0   : > { %v2636_v1 = vpack.c.bf16 %v2633_v61, %v2632_v59  ;;  %v2625_v2 = vmul.f32 %v3562_v0, %v2597_v57  ;;  %v2634_v3 = vmul.f32 %v3058_v56, %v2624_v62 }
0x11f2   : > { %3364 = vmatprep.mubr.bf16.mxu0 %v2636_v1  ;;  %v2635_v4 = vmul.f32 %v3058_v56, %v2625_v2 }
0x11f4   : > { %v2637_v5 = vpack.c.bf16 %v2635_v4, %v2634_v3 }
0x11f6   : > { %3365 = vmatmul.mubr.bf16.vlgmr.msra.gmra.mrb[48].mxu0 %v2637_v5 }
0x12c9   : > { %v3366_v6 = vpop.f32.mrb[48].mxu0  ;;  %2762 = sbr.rel (%p3067_p6) target bundleno = 4816 (0x12d0), region = 92 }
0x12ca   : > { %v2753_v7 = vadd.f32 %v3366_v6, %v4202_v26  ;;  %v2736_v9 = vpop.f32.mrb[49].mxu0 }
0x12cb   : > { %v2751_v10 = vadd.f32 %v2736_v9, %v4194_v34  ;;  %v3367_v11 = vpop.f32.mrb[50].mxu0 }
0x12cc   : > { %2757 = vst.msk [vmem:[#allocation2 + $0x10] sm:$0xff] %vm825_vm1, %v2753_v7  ;;  %v2754_v8 = vadd.f32 %v3367_v11, %v4206_v21  ;;  %v2739_v12 = vpop.f32.mrb[51].mxu0  ;;  %2765 = vst.msk [vmem:[#allocation3 + $0x10] sm:$0xff] (!%p3067_p6), %vm825_vm1, %v2753_v7 }
0x12cd   : > { %2755 = vst.msk [vmem:[#allocation2] sm:$0xff] %vm825_vm1, %v2751_v10  ;;  %v2752_v13 = vadd.f32 %v2739_v12, %v4198_v41  ;;  %2763 = vst.msk [vmem:[#allocation3] sm:$0xff] (!%p3067_p6), %vm825_vm1, %v2751_v10 }
0x12ce   : > { %2758 = vst.msk [vmem:[#allocation2 + $0x18] sm:$0xff] %vm825_vm1, %v2754_v8  ;;  %2766 = vst.msk [vmem:[#allocation3 + $0x18] sm:$0xff] (!%p3067_p6), %vm825_vm1, %v2754_v8 }
0x12cf   : > { %2756 = vst.msk [vmem:[#allocation2 + $0x8] sm:$0xff] %vm825_vm1, %v2752_v13  ;;  %2764 = vst.msk [vmem:[#allocation3 + $0x8] sm:$0xff] (!%p3067_p6), %vm825_vm1, %v2752_v13 }
0x12d0 PF: > { %s4341_s26 = sld [smem:[#allocation7_spill]]  ;;  %s3629_s7 = smov [#allocation3]  }
0x12d1   : > { %s2777_s18 = sshll.u32 %s3629_s7, 4  ;;  %s2778_s18 = int_to_ptr.vmem [resolvable:$true] %s2777_s18 }
0x12d2   : > { %s3567_s21 = scalar_lea.vmem %s2778_s18, 512  ;;  %p3574_p11 = scmp.lt.s32.totalorder %s2778_s18, %s2778_s18 }
0x12d3   : > { %p3568_p8 = scmp.ne.s32.totalorder %s2778_s18, %s3567_s21  ;;  %p3575_p12 = scmp.lt.s32.totalorder %s3567_s21, %s3567_s21 }
0x12d5   : > { %p3576_p13 = por %p3575_p12, %p3574_p11 }
0x12d6   : > { %s4342_s20 = sadd.s32 4294967295, %s4341_s26  }
0x12d7   : > { %p4255_p7 = scmp.eq.s32.totalorder %s4342_s20, 1 }
0x12d9   : > { %p3569_p9 = pnand %p3568_p8, %p4255_p7 }
0x12db   : > { %p3570_p10 = pneg %p3569_p9 }
0x12dd   : > { %p3577_p0 = pnand %p3576_p13, %p3570_p10 }
0x12df   : > { %3580 = shalt.err (!%p3577_p0)
}
0x12e0   : > { %s4344_s25 = sld [smem:[#allocation17_spill]] }
0x12e6   : > { %s3581_s17 = scalar_lea.hbm %s4344_s25, 512 }
0x12e7   : > { %p3582_p1 = scmp.ne.s32.totalorder %s4344_s25, %s3581_s17  ;;  %p3587_p4 = scmp.lt.u32.totalorder %s3581_s17, %s4344_s25 }
0x12e9   : > { %p3583_p2 = pnand %p3582_p1, %p4255_p7 }
0x12eb   : > { %p3584_p3 = pneg %p3583_p2 }
0x12ed   : > { %p3589_p5 = pnand %p3587_p4, %p3584_p3 }
0x12ef   : > { %3592 = shalt.err (!%p3589_p5)
}
0x12f0   : > { %s3630_s22 = smov 128   ;;  %s3631_s1 = smov 8  }
0x12f1   : > { %3369 = dma.vmem_to_hbm [thread:$0]  (%p4255_p7), %s2778_s18, 512, %s4344_s25, [#allocation4], %s3630_s22, %s3630_s22, %s3631_s1  }
0x12f2   : > { %3606 = dma.done.wait (%p4255_p7), [#allocation4], 512  }
0x12f3   : > { %3608 = vsyncadd (%p4255_p7), [#allocation4], 4294966784 }
0x12f4 PF: > { %s4345_s5 = sld [smem:[#allocation7_spill]]  ;;  %s4346_s21 = sld [smem:[#allocation6_spill]] }
0x12f5   : > { %s4347_s22 = sld [smem:[#allocation8_spill]] }
0x12fa   : > { %s27_s23 = sadd.s32 1, %s4345_s5  }
0x12fb   : > { %p24_p6 = scmp.ge.s32.totalorder %s27_s23, 4  }
0x12fd   :  { %26 = sbr.rel (!%p24_p6) target bundleno = 12 (0xc), region = 165 }
0x1304   :  { %2793 = vsyncpa [#allocation4], 1 }
0x1305   :  { %2795 = vsyncpa [#allocation4 + $0x1], 1 }

</bundles_post_ra>
